<compile_context>
chip_gen: v5e
topology: v5e:2x2
jax: 0.10.0
libtpu: 0.0.40
codegen_flags: <defaults>
</compile_context>

<pallas_src>
import math

import jax
import jax.numpy as jnp
from jax import lax
from jax.experimental import pallas as pl
from jax.experimental.pallas import tpu as pltpu

# ---------------- config (small, consistent with the module) ----------------
BATCH = 2
SEQ = 8
HIDDEN = 32
NUM_HEADS = 4
HEAD_DIM = HIDDEN // NUM_HEADS            # 8
BANDS = 4
TABLE_SIZE = 16                           # power of two -> mod == bitwise AND
NUM_HASHES = 3
N = NUM_HEADS * BATCH                     # fused (head, batch) attention-batch axis
R = NUM_HASHES * BANDS                    # total hyperplanes per (batch, head)

# packed LSH-slab row offsets (8-aligned so in-kernel slices are sublane-aligned)
_RV_ROW = 0                               # rv: rows [0, 12),  lanes [0, 8)
_CR_ROW = 16                              # cr: rows [16, 28), lanes [0, 3)
_CC_ROW = 32                              # cc: rows [32, 35), lanes [0, 12)
_SLAB_ROWS = 40
_SLAB_LANES = 16


# ---------------- the single fused kernel ----------------
def _fused_lsh_attention_kernel(x_ref, wb_ref, lsh_ref, mask_ref, o_ref):
    # x:    (B, S, HIDDEN)
    # wb:   (HIDDEN+1, 3*HIDDEN)   rows 0..31 = [Wq.T | Wk.T | Wv.T], row 32 = bias
    # lsh:  (N, 40, 16)            packed rv / cr / cc slab, n = h*B + b
    # mask: (N, 1, S)              additive attention mask (zeros when None)
    # o:    (B, S, HIDDEN)         lane-dense merged-head output
    f32 = jnp.float32

    # ---- unpack the packed static-prep slabs (static value slices, cheap) ----
    wb = wb_ref[...]
    w_qkv = wb[0:HIDDEN, :]                                   # (32, 96)
    b_qkv = wb[HIDDEN:HIDDEN + 1, :]                          # (1, 96)

    lsh = lsh_ref[...]
    rv = lsh[:, _RV_ROW:_RV_ROW + R, 0:HEAD_DIM]              # (N, 12, 8)
    cr = lsh[:, _CR_ROW:_CR_ROW + R, 0:NUM_HASHES]            # (N, 12, 3)  row fold
    cc = lsh[:, _CC_ROW:_CC_ROW + NUM_HASHES, 0:R]            # (N, 3, 12)  col fold

    # ---- fused QKV projection (one MXU matmul) ----
    x = x_ref[...].reshape(BATCH * SEQ, HIDDEN)
    qkv = jnp.dot(x, w_qkv, preferred_element_type=f32) + b_qkv   # (B*S, 96)

    # ---- head split: (B*S, 96) -> (N, S, d) with n = h*B + b ----
    # Static lane slices + major-axis reshape/concat only (no sub-tile transposes).
    # TODO(synk): per review item 6 a head-as-axis layout could shave a few lane
    # slices, but it trades one big QKV push for batched small pushes; MXU push
    # count dominates here so the single fused matmul is kept.
    def head_block(offset):
        parts = []
        for h in range(NUM_HEADS):
            lane0 = offset + h * HEAD_DIM
            parts.append(qkv[:, lane0:lane0 + HEAD_DIM].reshape(BATCH, SEQ, HEAD_DIM))
        return jnp.concatenate(parts, axis=0)                 # (N, S, d)

    q = head_block(0)
    k = head_block(HIDDEN)
    v = head_block(2 * HIDDEN)

    # ---- stacked [q; k] per (head, batch): one operand feeds hashing AND Gram ----
    st = jnp.concatenate([q, k], axis=1)                      # (N, 2S, d)

    # ---- LSH hashing, batched over all (head, batch) and both q/k at once ----
    # Row orientation indexes the attention ROW (sublanes); column orientation
    # indexes the attention COLUMN (lanes).  Both come from operand-swapped
    # einsums (MXU is idle here) instead of in-kernel transposes.
    proj_row = jnp.einsum('nsd,nrd->nsr', st, rv, preferred_element_type=f32)  # (N,2S,R)
    proj_col = jnp.einsum('nrd,nsd->nrs', rv, st, preferred_element_type=f32)  # (N,R,2S)
    bits_row = (proj_row > 0.0).astype(f32)                   # strict >0, as torch
    bits_col = (proj_col > 0.0).astype(f32)
    h_row = jnp.einsum('nsr,nrh->nsh', bits_row, cr, preferred_element_type=f32)
    h_col = jnp.einsum('nhr,nrs->nhs', cc, bits_col, preferred_element_type=f32)
    # power-of-two table size -> single VALU AND instead of integer modulo
    h_row = jnp.bitwise_and(h_row.astype(jnp.int32), TABLE_SIZE - 1)  # (N,2S,NH)
    h_col = jnp.bitwise_and(h_col.astype(jnp.int32), TABLE_SIZE - 1)  # (N,NH,2S)

    # full (2S x 2S) collision matrix on the stacked vectors: collide iff ANY
    # hash function gives equal bucket values (exactly torch's bucket criterion)
    coll = h_row[:, :, 0:1] == h_col[:, 0:1, :]               # (N, 2S, 2S)
    for h in range(1, NUM_HASHES):
        coll = coll | (h_row[:, :, h:h + 1] == h_col[:, h:h + 1, :])

    # ---- one Gram matmul gives both score orientations as static slices ----
    gram = jnp.einsum('nad,nbd->nab', st, st, preferred_element_type=f32)  # (N,2S,2S)
    masked = jnp.where(coll, gram, 0.0)       # non-collided entries stay 0.0 (NOT -inf)

    s_qk = masked[:, 0:SEQ, SEQ:2 * SEQ]      # q_i.k_j  (upper-triangle source)
    s_kq = masked[:, SEQ:2 * SEQ, 0:SEQ]      # k_i.q_j  (mirrored lower-triangle source)

    row = lax.broadcasted_iota(jnp.int32, (N, SEQ, SEQ), 1)
    col = lax.broadcasted_iota(jnp.int32, (N, SEQ, SEQ), 2)
    scores = jnp.where(row <= col, s_qk, s_kq)
    scores = scores * (1.0 / math.sqrt(HEAD_DIM)) + mask_ref[...]

    # ---- softmax + context ----
    m = jnp.max(scores, axis=-1, keepdims=True)
    e = jnp.exp(scores - m)
    probs = e * pl.reciprocal(jnp.sum(e, axis=-1, keepdims=True), approx=True)
    # TODO(synk): attention_probs dropout omitted -- inference/eval mode => identity.
    ctx = jnp.einsum('nij,njd->nid', probs, v, preferred_element_type=f32)   # (N,S,d)

    # ---- merge heads in registers and store ONCE: (N,S,d) -> (B,S,H*d) ----
    merged = jnp.concatenate(
        [ctx[h * BATCH:(h + 1) * BATCH] for h in range(NUM_HEADS)], axis=-1)  # (B,S,32)
    o_ref[...] = merged


# ---------------- one-time parameter / LSH prep (setup-time, outside kernel) ----------------
def prepare_params(params):
    """Pre-transpose & concatenate nn.Linear-style weights plus bias into one slab."""
    w = jnp.concatenate(
        [params["wq"].T, params["wk"].T, params["wv"].T], axis=1)       # (HIDDEN, 96)
    b = jnp.concatenate(
        [params["bq"], params["bk"], params["bv"]]).reshape(1, 3 * HIDDEN)
    return jnp.concatenate([w, b], axis=0)                               # (33, 96)


def prepare_lsh(random_vectors, hash_coefs):
    """Reorder per-(batch,head) LSH randomness to n = h*B + b, build the
    block-diagonal coefficient fold matrices, and pack rv/cr/cc into ONE
    (N, 40, 16) f32 slab (8-aligned row offsets) -> single DMA per call."""
    rv = jnp.transpose(random_vectors, (1, 0, 2, 3, 4)).reshape(N, R, HEAD_DIM)
    coef = jnp.transpose(hash_coefs, (1, 0, 2, 3)).reshape(
        N, NUM_HASHES, BANDS).astype(jnp.float32)
    eye = jnp.eye(NUM_HASHES, dtype=jnp.float32)
    # cr[n, h*BANDS+b, h'] = coef[n, h, b] * [h == h']
    cr = (coef[:, :, :, None] * eye[None, :, None, :]).reshape(N, R, NUM_HASHES)
    cc = jnp.swapaxes(cr, 1, 2)                                          # (N, NH, R)

    slab = jnp.zeros((N, _SLAB_ROWS, _SLAB_LANES), jnp.float32)
    slab = slab.at[:, _RV_ROW:_RV_ROW + R, 0:HEAD_DIM].set(rv)
    slab = slab.at[:, _CR_ROW:_CR_ROW + R, 0:NUM_HASHES].set(cr)
    slab = slab.at[:, _CC_ROW:_CC_ROW + NUM_HASHES, 0:R].set(cc)
    return slab


# ---------------- forward wrapper: a single grid-less pallas_call ----------------
def _forward(hidden_states, prep, attention_mask=None):
    if attention_mask is None:
        mask_n = jnp.zeros((N, 1, SEQ), jnp.float32)
    else:  # expects the usual (B, 1, 1, S) additive mask
        mask_n = jnp.broadcast_to(
            attention_mask.reshape(BATCH, 1, SEQ)[None],
            (NUM_HEADS, BATCH, 1, SEQ)).reshape(N, 1, SEQ)

    vmem = pl.BlockSpec(memory_space=pltpu.MemorySpace.VMEM)
    return pl.pallas_call(
        _fused_lsh_attention_kernel,
        out_shape=jax.ShapeDtypeStruct((BATCH, SEQ, HIDDEN), jnp.float32),
        in_specs=[vmem] * 4,      # x, packed weights, packed LSH slab, mask
        out_specs=vmem,
    )(hidden_states, prep["wb"], prep["lsh"], mask_n)


bert_lsh_self_attention = jax.jit(_forward)


# ---------------- main ----------------
if __name__ == "__main__":
    key = jax.random.PRNGKey(0)
    keys = jax.random.split(key, 10)

    hidden_states = jax.random.normal(keys[0], (BATCH, SEQ, HIDDEN), jnp.float32)

    # nn.Linear-style parameters: weight (out, in), bias (out,)
    params = {
        "wq": 0.05 * jax.random.normal(keys[1], (HIDDEN, HIDDEN), jnp.float32),
        "bq": 0.05 * jax.random.normal(keys[2], (HIDDEN,), jnp.float32),
        "wk": 0.05 * jax.random.normal(keys[3], (HIDDEN, HIDDEN), jnp.float32),
        "bk": 0.05 * jax.random.normal(keys[4], (HIDDEN,), jnp.float32),
        "wv": 0.05 * jax.random.normal(keys[5], (HIDDEN, HIDDEN), jnp.float32),
        "bv": 0.05 * jax.random.normal(keys[6], (HIDDEN,), jnp.float32),
    }

    # Per-(batch, head) LSH randomness (mirrors a fresh LSH object per (b, h)).
    random_vectors = jax.random.normal(
        keys[7], (BATCH, NUM_HEADS, NUM_HASHES, BANDS, HEAD_DIM), jnp.float32)
    hash_coefs = jax.random.randint(
        keys[8], (BATCH, NUM_HEADS, NUM_HASHES, BANDS), 0, TABLE_SIZE,
        dtype=jnp.int32)

    # One-time setup: packed weight slab + packed LSH slab.
    prep = {"wb": prepare_params(params),
            "lsh": prepare_lsh(random_vectors, hash_coefs)}

    out = bert_lsh_self_attention(hidden_states, prep)
    out = jax.block_until_ready(out)

    assert out.shape == (BATCH, SEQ, HIDDEN), out.shape
    assert bool(jnp.all(jnp.isfinite(out)))
    print("KERNEL_OK")
</pallas_src>

<mosaic_0001>
module attributes {stable_mosaic.version = 11 : i64} {
  func.func @_fused_lsh_attention_kernel(%arg0: memref<2x8x32xf32, #tpu.memory_space<vmem>>, %arg1: memref<33x96xf32, #tpu.memory_space<vmem>>, %arg2: memref<8x40x16xf32, #tpu.memory_space<vmem>>, %arg3: memref<8x1x8xf32, #tpu.memory_space<vmem>>, %arg4: memref<2x8x32xf32, #tpu.memory_space<vmem>>) attributes {dimension_semantics = [], scalar_prefetch = 0 : i64, scratch_operands = 0 : i64, tpu.core_type = #tpu.core_type<tc>} {
    %c0 = arith.constant 0 : index
    %c0_0 = arith.constant 0 : index
    %0 = vector.load %arg1[%c0, %c0_0] : memref<33x96xf32, #tpu.memory_space<vmem>>, vector<33x96xf32>
    %1 = vector.extract_strided_slice %0 {offsets = [0, 0], sizes = [32, 96], strides = [1, 1]} : vector<33x96xf32> to vector<32x96xf32>
    %2 = vector.extract_strided_slice %0 {offsets = [32, 0], sizes = [1, 96], strides = [1, 1]} : vector<33x96xf32> to vector<1x96xf32>
    %c0_1 = arith.constant 0 : index
    %c0_2 = arith.constant 0 : index
    %c0_3 = arith.constant 0 : index
    %3 = vector.load %arg2[%c0_1, %c0_2, %c0_3] : memref<8x40x16xf32, #tpu.memory_space<vmem>>, vector<8x40x16xf32>
    %4 = vector.extract_strided_slice %3 {offsets = [0, 0, 0], sizes = [8, 12, 8], strides = [1, 1, 1]} : vector<8x40x16xf32> to vector<8x12x8xf32>
    %5 = vector.extract_strided_slice %3 {offsets = [0, 16, 0], sizes = [8, 12, 3], strides = [1, 1, 1]} : vector<8x40x16xf32> to vector<8x12x3xf32>
    %6 = vector.extract_strided_slice %3 {offsets = [0, 32, 0], sizes = [8, 3, 12], strides = [1, 1, 1]} : vector<8x40x16xf32> to vector<8x3x12xf32>
    %c0_4 = arith.constant 0 : index
    %c0_5 = arith.constant 0 : index
    %c0_6 = arith.constant 0 : index
    %7 = vector.load %arg0[%c0_4, %c0_5, %c0_6] : memref<2x8x32xf32, #tpu.memory_space<vmem>>, vector<2x8x32xf32>
    %8 = vector.shape_cast %7 : vector<2x8x32xf32> to vector<16x32xf32>
    %cst = arith.constant dense<0.000000e+00> : vector<16x96xf32>
    %9 = tpu.matmul %8, %1, %cst {dimension_numbers = #tpu.dot_dimension_numbers<[1], [0], [0], [1], [0, 0, 1, 1], [], []>} : vector<16x32xf32>, vector<32x96xf32>, vector<16x96xf32> -> vector<16x96xf32>
    %10 = vector.broadcast %2 : vector<1x96xf32> to vector<16x96xf32>
    %11 = arith.addf %9, %10 : vector<16x96xf32>
    %12 = vector.extract_strided_slice %11 {offsets = [0, 0], sizes = [16, 8], strides = [1, 1]} : vector<16x96xf32> to vector<16x8xf32>
    %13 = vector.shape_cast %12 : vector<16x8xf32> to vector<2x8x8xf32>
    %14 = vector.extract_strided_slice %11 {offsets = [0, 8], sizes = [16, 8], strides = [1, 1]} : vector<16x96xf32> to vector<16x8xf32>
    %15 = vector.shape_cast %14 : vector<16x8xf32> to vector<2x8x8xf32>
    %16 = vector.extract_strided_slice %11 {offsets = [0, 16], sizes = [16, 8], strides = [1, 1]} : vector<16x96xf32> to vector<16x8xf32>
    %17 = vector.shape_cast %16 : vector<16x8xf32> to vector<2x8x8xf32>
    %18 = vector.extract_strided_slice %11 {offsets = [0, 24], sizes = [16, 8], strides = [1, 1]} : vector<16x96xf32> to vector<16x8xf32>
    %19 = vector.shape_cast %18 : vector<16x8xf32> to vector<2x8x8xf32>
    %20 = tpu.concatenate %13, %15, %17, %19 in 0 : vector<2x8x8xf32>, vector<2x8x8xf32>, vector<2x8x8xf32>, vector<2x8x8xf32> -> vector<8x8x8xf32>
    %21 = vector.extract_strided_slice %11 {offsets = [0, 32], sizes = [16, 8], strides = [1, 1]} : vector<16x96xf32> to vector<16x8xf32>
    %22 = vector.shape_cast %21 : vector<16x8xf32> to vector<2x8x8xf32>
    %23 = vector.extract_strided_slice %11 {offsets = [0, 40], sizes = [16, 8], strides = [1, 1]} : vector<16x96xf32> to vector<16x8xf32>
    %24 = vector.shape_cast %23 : vector<16x8xf32> to vector<2x8x8xf32>
    %25 = vector.extract_strided_slice %11 {offsets = [0, 48], sizes = [16, 8], strides = [1, 1]} : vector<16x96xf32> to vector<16x8xf32>
    %26 = vector.shape_cast %25 : vector<16x8xf32> to vector<2x8x8xf32>
    %27 = vector.extract_strided_slice %11 {offsets = [0, 56], sizes = [16, 8], strides = [1, 1]} : vector<16x96xf32> to vector<16x8xf32>
    %28 = vector.shape_cast %27 : vector<16x8xf32> to vector<2x8x8xf32>
    %29 = tpu.concatenate %22, %24, %26, %28 in 0 : vector<2x8x8xf32>, vector<2x8x8xf32>, vector<2x8x8xf32>, vector<2x8x8xf32> -> vector<8x8x8xf32>
    %30 = vector.extract_strided_slice %11 {offsets = [0, 64], sizes = [16, 8], strides = [1, 1]} : vector<16x96xf32> to vector<16x8xf32>
    %31 = vector.shape_cast %30 : vector<16x8xf32> to vector<2x8x8xf32>
    %32 = vector.extract_strided_slice %11 {offsets = [0, 72], sizes = [16, 8], strides = [1, 1]} : vector<16x96xf32> to vector<16x8xf32>
    %33 = vector.shape_cast %32 : vector<16x8xf32> to vector<2x8x8xf32>
    %34 = vector.extract_strided_slice %11 {offsets = [0, 80], sizes = [16, 8], strides = [1, 1]} : vector<16x96xf32> to vector<16x8xf32>
    %35 = vector.shape_cast %34 : vector<16x8xf32> to vector<2x8x8xf32>
    %36 = vector.extract_strided_slice %11 {offsets = [0, 88], sizes = [16, 8], strides = [1, 1]} : vector<16x96xf32> to vector<16x8xf32>
    %37 = vector.shape_cast %36 : vector<16x8xf32> to vector<2x8x8xf32>
    %38 = tpu.concatenate %31, %33, %35, %37 in 0 : vector<2x8x8xf32>, vector<2x8x8xf32>, vector<2x8x8xf32>, vector<2x8x8xf32> -> vector<8x8x8xf32>
    %39 = tpu.concatenate %20, %29 in 1 : vector<8x8x8xf32>, vector<8x8x8xf32> -> vector<8x16x8xf32>
    "tpu.trace_start"() <{level = 10 : i32, message = "nsd,nrd->nsr"}> : () -> ()
    %cst_7 = arith.constant dense<0.000000e+00> : vector<8x16x12xf32>
    %40 = tpu.matmul %39, %4, %cst_7 {dimension_numbers = #tpu.dot_dimension_numbers<[2], [2], [1], [1], [0, 0, 0, 1, 1, 1], [0], [0]>} : vector<8x16x8xf32>, vector<8x12x8xf32>, vector<8x16x12xf32> -> vector<8x16x12xf32>
    "tpu.trace_stop"() : () -> ()
    "tpu.trace_start"() <{level = 10 : i32, message = "nrd,nsd->nrs"}> : () -> ()
    %cst_8 = arith.constant dense<0.000000e+00> : vector<8x12x16xf32>
    %41 = tpu.matmul %4, %39, %cst_8 {dimension_numbers = #tpu.dot_dimension_numbers<[2], [2], [1], [1], [0, 0, 0, 1, 1, 1], [0], [0]>} : vector<8x12x8xf32>, vector<8x16x8xf32>, vector<8x12x16xf32> -> vector<8x12x16xf32>
    %cst_9 = arith.constant 0.000000e+00 : f32
    "tpu.trace_stop"() : () -> ()
    %42 = vector.broadcast %cst_9 : f32 to vector<8x16x12xf32>
    %43 = arith.cmpf ogt, %40, %42 : vector<8x16x12xf32>
    %44 = arith.extui %43 : vector<8x16x12xi1> to vector<8x16x12xi32>
    %45 = arith.sitofp %44 : vector<8x16x12xi32> to vector<8x16x12xf32>
    %cst_10 = arith.constant 0.000000e+00 : f32
    %46 = vector.broadcast %cst_10 : f32 to vector<8x12x16xf32>
    %47 = arith.cmpf ogt, %41, %46 : vector<8x12x16xf32>
    %48 = arith.extui %47 : vector<8x12x16xi1> to vector<8x12x16xi32>
    %49 = arith.sitofp %48 : vector<8x12x16xi32> to vector<8x12x16xf32>
    "tpu.trace_start"() <{level = 10 : i32, message = "nsr,nrh->nsh"}> : () -> ()
    %cst_11 = arith.constant dense<0.000000e+00> : vector<8x16x3xf32>
    %50 = tpu.matmul %45, %5, %cst_11 {dimension_numbers = #tpu.dot_dimension_numbers<[2], [1], [1], [2], [0, 0, 0, 1, 1, 2], [0], [0]>} : vector<8x16x12xf32>, vector<8x12x3xf32>, vector<8x16x3xf32> -> vector<8x16x3xf32>
    "tpu.trace_stop"() : () -> ()
    "tpu.trace_start"() <{level = 10 : i32, message = "nhr,nrs->nhs"}> : () -> ()
    %cst_12 = arith.constant dense<0.000000e+00> : vector<8x3x16xf32>
    %51 = tpu.matmul %6, %49, %cst_12 {dimension_numbers = #tpu.dot_dimension_numbers<[2], [1], [1], [2], [0, 0, 0, 1, 1, 2], [0], [0]>} : vector<8x3x12xf32>, vector<8x12x16xf32>, vector<8x3x16xf32> -> vector<8x3x16xf32>
    "tpu.trace_stop"() : () -> ()
    %52 = arith.fptosi %50 : vector<8x16x3xf32> to vector<8x16x3xi32>
    %c15_i32 = arith.constant 15 : i32
    %53 = vector.broadcast %c15_i32 : i32 to vector<8x16x3xi32>
    %54 = arith.andi %52, %53 : vector<8x16x3xi32>
    %55 = arith.fptosi %51 : vector<8x3x16xf32> to vector<8x3x16xi32>
    %c15_i32_13 = arith.constant 15 : i32
    %56 = vector.broadcast %c15_i32_13 : i32 to vector<8x3x16xi32>
    %57 = arith.andi %55, %56 : vector<8x3x16xi32>
    %58 = vector.extract_strided_slice %54 {offsets = [0, 0, 0], sizes = [8, 16, 1], strides = [1, 1, 1]} : vector<8x16x3xi32> to vector<8x16x1xi32>
    %59 = vector.extract_strided_slice %57 {offsets = [0, 0, 0], sizes = [8, 1, 16], strides = [1, 1, 1]} : vector<8x3x16xi32> to vector<8x1x16xi32>
    %60 = vector.broadcast %58 : vector<8x16x1xi32> to vector<8x16x16xi32>
    %61 = vector.broadcast %59 : vector<8x1x16xi32> to vector<8x16x16xi32>
    %62 = arith.cmpi eq, %60, %61 : vector<8x16x16xi32>
    %63 = vector.extract_strided_slice %54 {offsets = [0, 0, 1], sizes = [8, 16, 1], strides = [1, 1, 1]} : vector<8x16x3xi32> to vector<8x16x1xi32>
    %64 = vector.extract_strided_slice %57 {offsets = [0, 1, 0], sizes = [8, 1, 16], strides = [1, 1, 1]} : vector<8x3x16xi32> to vector<8x1x16xi32>
    %65 = vector.broadcast %63 : vector<8x16x1xi32> to vector<8x16x16xi32>
    %66 = vector.broadcast %64 : vector<8x1x16xi32> to vector<8x16x16xi32>
    %67 = arith.cmpi eq, %65, %66 : vector<8x16x16xi32>
    %68 = arith.ori %62, %67 : vector<8x16x16xi1>
    %69 = vector.extract_strided_slice %54 {offsets = [0, 0, 2], sizes = [8, 16, 1], strides = [1, 1, 1]} : vector<8x16x3xi32> to vector<8x16x1xi32>
    %70 = vector.extract_strided_slice %57 {offsets = [0, 2, 0], sizes = [8, 1, 16], strides = [1, 1, 1]} : vector<8x3x16xi32> to vector<8x1x16xi32>
    %71 = vector.broadcast %69 : vector<8x16x1xi32> to vector<8x16x16xi32>
    %72 = vector.broadcast %70 : vector<8x1x16xi32> to vector<8x16x16xi32>
    %73 = arith.cmpi eq, %71, %72 : vector<8x16x16xi32>
    %74 = arith.ori %68, %73 : vector<8x16x16xi1>
    "tpu.trace_start"() <{level = 10 : i32, message = "nad,nbd->nab"}> : () -> ()
    %cst_14 = arith.constant dense<0.000000e+00> : vector<8x16x16xf32>
    %75 = tpu.matmul %39, %39, %cst_14 {dimension_numbers = #tpu.dot_dimension_numbers<[2], [2], [1], [1], [0, 0, 0, 1, 1, 1], [0], [0]>} : vector<8x16x8xf32>, vector<8x16x8xf32>, vector<8x16x16xf32> -> vector<8x16x16xf32>
    %cst_15 = arith.constant 0.000000e+00 : f32
    "tpu.trace_stop"() : () -> ()
    %76 = vector.broadcast %cst_15 : f32 to vector<8x16x16xf32>
    %77 = arith.select %74, %75, %76 : vector<8x16x16xi1>, vector<8x16x16xf32>
    %78 = vector.extract_strided_slice %77 {offsets = [0, 0, 8], sizes = [8, 8, 8], strides = [1, 1, 1]} : vector<8x16x16xf32> to vector<8x8x8xf32>
    %79 = vector.extract_strided_slice %77 {offsets = [0, 8, 0], sizes = [8, 8, 8], strides = [1, 1, 1]} : vector<8x16x16xf32> to vector<8x8x8xf32>
    %80 = tpu.iota {dimensions = array<i32: 1>} : vector<8x8x8xi32>
    %81 = tpu.iota {dimensions = array<i32: 2>} : vector<8x8x8xi32>
    %82 = arith.cmpi sle, %80, %81 : vector<8x8x8xi32>
    %83 = arith.select %82, %78, %79 : vector<8x8x8xi1>, vector<8x8x8xf32>
    %cst_16 = arith.constant 0.353553385 : f32
    %84 = vector.broadcast %cst_16 : f32 to vector<8x8x8xf32>
    %85 = arith.mulf %83, %84 : vector<8x8x8xf32>
    %c0_17 = arith.constant 0 : index
    %c0_18 = arith.constant 0 : index
    %c0_19 = arith.constant 0 : index
    %86 = vector.load %arg3[%c0_17, %c0_18, %c0_19] : memref<8x1x8xf32, #tpu.memory_space<vmem>>, vector<8x1x8xf32>
    %87 = vector.broadcast %86 : vector<8x1x8xf32> to vector<8x8x8xf32>
    %88 = arith.addf %85, %87 : vector<8x8x8xf32>
    %cst_20 = arith.constant dense<0xFF800000> : vector<8x8xf32>
    %89 = vector.multi_reduction <maximumf>, %88, %cst_20 [2] : vector<8x8x8xf32> to vector<8x8xf32>
    %90 = vector.shape_cast %89 : vector<8x8xf32> to vector<8x8x1xf32>
    %91 = vector.broadcast %90 : vector<8x8x1xf32> to vector<8x8x8xf32>
    %92 = arith.subf %88, %91 : vector<8x8x8xf32>
    %93 = math.exp %92 : vector<8x8x8xf32>
    %cst_21 = arith.constant dense<0.000000e+00> : vector<8x8xf32>
    %94 = vector.multi_reduction <add>, %93, %cst_21 [2] : vector<8x8x8xf32> to vector<8x8xf32>
    %95 = vector.shape_cast %94 : vector<8x8xf32> to vector<8x8x1xf32>
    %96 = tpu.reciprocal %95 {approx = true} : vector<8x8x1xf32> -> vector<8x8x1xf32>
    %97 = vector.broadcast %96 : vector<8x8x1xf32> to vector<8x8x8xf32>
    %98 = arith.mulf %93, %97 : vector<8x8x8xf32>
    "tpu.trace_start"() <{level = 10 : i32, message = "nij,njd->nid"}> : () -> ()
    %cst_22 = arith.constant dense<0.000000e+00> : vector<8x8x8xf32>
    %99 = tpu.matmul %98, %38, %cst_22 {dimension_numbers = #tpu.dot_dimension_numbers<[2], [1], [1], [2], [0, 0, 0, 1, 1, 2], [0], [0]>} : vector<8x8x8xf32>, vector<8x8x8xf32>, vector<8x8x8xf32> -> vector<8x8x8xf32>
    "tpu.trace_stop"() : () -> ()
    %100 = vector.extract_strided_slice %99 {offsets = [0, 0, 0], sizes = [2, 8, 8], strides = [1, 1, 1]} : vector<8x8x8xf32> to vector<2x8x8xf32>
    %101 = vector.extract_strided_slice %99 {offsets = [2, 0, 0], sizes = [2, 8, 8], strides = [1, 1, 1]} : vector<8x8x8xf32> to vector<2x8x8xf32>
    %102 = vector.extract_strided_slice %99 {offsets = [4, 0, 0], sizes = [2, 8, 8], strides = [1, 1, 1]} : vector<8x8x8xf32> to vector<2x8x8xf32>
    %103 = vector.extract_strided_slice %99 {offsets = [6, 0, 0], sizes = [2, 8, 8], strides = [1, 1, 1]} : vector<8x8x8xf32> to vector<2x8x8xf32>
    %104 = tpu.concatenate %100, %101, %102, %103 in 2 : vector<2x8x8xf32>, vector<2x8x8xf32>, vector<2x8x8xf32>, vector<2x8x8xf32> -> vector<2x8x32xf32>
    %c0_23 = arith.constant 0 : index
    %c0_24 = arith.constant 0 : index
    %c0_25 = arith.constant 0 : index
    %105 = vector.load %arg4[%c0_23, %c0_24, %c0_25] : memref<2x8x32xf32, #tpu.memory_space<vmem>>, vector<2x8x32xf32>
    tpu.vector_store %arg4[%c0_23, %c0_24, %c0_25], %104 {strides = array<i32>} : memref<2x8x32xf32, #tpu.memory_space<vmem>>, vector<2x8x32xf32>,
    return
  }
}

</mosaic_0001>

<bundles_post_ra>
// kernel: _forward.1
= control target key start
LH: loop header
LB: loop body
LE: loop exit
PB: predicated region body
PF: predicated region fallthrough
CT: control target
= control target key end

     0   :  { %vm3479_vm0 = vcmask 64512   ;;  %vm3478_vm1 = vcmask 261120   ;;  %s3473_s0 = inlined_call_operand.vmem [shape: f32[2,8,32], index: 0, kind: input, shape index: {}]   ;;  %s3474_s1 = inlined_call_operand.vmem [shape: f32[33,96], index: 1, kind: input, shape index: {}]   ;;  %s3475_s2 = inlined_call_operand.vmem [shape: f32[8,40,16], index: 2, kind: input, shape index: {}]   ;;  %s3476_s3 = inlined_call_operand.vmem [shape: f32[8,1,8], index: 3, kind: input, shape index: {}]   ;;  %s3477_s4 = inlined_call_operand.hbm [shape: f32[2,8,32], index: 4, kind: output, shape index: {}]  }
   0x1   :  { %v21_v0 = vld [vmem:[%s3474_s1 + $0x18] sm:$0xff]  ;;  %v20_v1 = vld [vmem:[%s3474_s1 + $0x10] sm:$0xff]  ;;  %v19_v2 = vld [vmem:[%s3474_s1 + $0x8] sm:$0xff] }
   0x2   :  { %85 = vmatpush.msra.mxu0 %v21_v0  ;;  %v18_v3 = vld [vmem:[%s3474_s1] sm:$0xff]  ;;  %v2581_v4 = vld [vmem:[%s3475_s2 + $0x8] sm:$0xff] }
   0x3   :  { %v63_v5 = vld [vmem:[%s3473_s0] sm:$0xff]  ;;  %2076 = vmatpush.xpose.msk.msra.mxu1 %vm3479_vm0, %v2581_v4 }
   0x4   :  { %86 = vmatpush.msra.mxu0 %v20_v1 }
   0x6   :  { %87 = vmatpush.msra.mxu0 %v19_v2 }
   0x7   :  { %9 = vsyncpa [#allocation3], 0  ;;  %v64_v6 = vld [vmem:[%s3473_s0 + $0x8] sm:$0xff]  ;;  %v2596_v7 = vld [vmem:[%s3475_s2] sm:$0xff]  ;;  %s2526_s10 = smov 104   ;;  %s2527_s11 = smov 120  }
   0x8   :  { %88 = vmatpush.msra.mxu0 %v18_v3  ;;  %2077 = vmatpush.xpose.msk.msra.mxu1 %vm3479_vm0, %v2596_v7  ;;  %v2603_v8 = vld [vmem:[%s3475_s2 + $0x30] sm:$0xff]  ;;  %v2610_v9 = vld [vmem:[%s3475_s2 + $0x28] sm:$0xff]  ;;  %v2459_v10 = vld [vmem:[%s3474_s1 + $0x20] ss:$0 sm:$0xff]  ;;  %s2528_s1 = smov 112   ;;  %s2529_s12 = smov 96  }
   0x9   :  { %2074 = vmatmul.msk.f32.vlgmr.msra.gmra.mxu0 %vm3478_vm1, %v63_v5  ;;  %2080 = vmatpush.xpose.msk.msra.mxu2 %vm3479_vm0, %v2603_v8  ;;  %v2640_v15 = vld [vmem:[%s3475_s2 + $0x58] sm:$0xff]  ;;  %v2647_v16 = vld [vmem:[%s3475_s2 + $0x50] sm:$0xff]  ;;  %v2654_v17 = vld [vmem:[%s3475_s2 + $0x80] sm:$0xff]  ;;  %vm678_vm2 = vcmask 1043456   ;;  %vm671_vm4 = vcmask 97280   ;;  %v2530_v50 = vmov 0.0  }
   0xa   :  { %2084 = vmatpush.xpose.msk.msra.mxu3 %vm3479_vm0, %v2640_v15  ;;  %2088 = vmatpush.xpose.msk.msrb.mxu0 %vm3479_vm0, %v2654_v17  ;;  %v2661_v18 = vld [vmem:[%s3475_s2 + $0x78] sm:$0xff]  ;;  %v2668_v19 = vld [vmem:[%s3475_s2 + $0xd0] sm:$0xff]  ;;  %v2675_v20 = vld [vmem:[%s3475_s2 + $0xc8] sm:$0xff]  ;;  %s2535_s14 = smov 64   ;;  %s2537_s19 = smov 8  }
   0xb   :  { %v2682_v21 = vld [vmem:[%s3475_s2 + $0xa8] sm:$0xff]  ;;  %v43_v22 = vld [vmem:[%s3475_s2 + $0xa0] sm:$0xff]  ;;  %v2699_v24 = vld [vmem:[%s3475_s2 + $0xf8] sm:$0xff]  ;;  %s2538_s20 = smov 24   ;;  %s2062_s23 = sshll.u32 %s3477_s4, 4  ;;  %s2063_s23 = int_to_ptr.hbm [resolvable:$true] %s2062_s23 }
   0xc   :  { %2092 = vmatpush.xpose.msk.msrb.mxu1 %vm3479_vm0, %v2682_v21  ;;  %v2706_v25 = vld [vmem:[%s3475_s2 + $0xf0] sm:$0xff]  ;;  %v2755_v33 = vld [vmem:[%s3475_s2 + $0x120] sm:$0xff]  ;;  %v2762_v34 = vld [vmem:[%s3475_s2 + $0x118] sm:$0xff]  ;;  %s2539_s24 = smov [#allocation2]   ;;  %s2540_s26 = smov 128  }
   0xd   :  { %2081 = vmatpush.xpose.msk.msra.mxu2 %vm3479_vm0, %v2610_v9  ;;  %v26_v37 = vld [vmem:[%s3475_s2 + $0x18] sm:$0xff]  ;;  %v25_v38 = vld [vmem:[%s3475_s2 + $0x10] sm:$0xff]  ;;  %v31_v43 = vld [vmem:[%s3475_s2 + $0x40] sm:$0xff]  ;;  %s2060_s25 = sshll.u32 %s2539_s24, 4  ;;  %s2061_s25 = int_to_ptr.vmem [resolvable:$true] %s2060_s25 }
   0xe   :  { %2085 = vmatpush.xpose.msk.msra.mxu3 %vm3479_vm0, %v2647_v16  ;;  %2089 = vmatpush.xpose.msk.msrb.mxu0 %vm3479_vm0, %v2661_v18  ;;  %v46_v44 = vld [vmem:[%s3475_s2 + $0xb8] sm:$0xff]  ;;  %v45_v46 = vld [vmem:[%s3475_s2 + $0xb0] sm:$0xff]  ;;  %v36_v47 = vld [vmem:[%s3475_s2 + $0x68] sm:$0xff] }
   0xf   :  { %v30_v45 = vld [vmem:[%s3475_s2 + $0x38] sm:$0xff]  ;;  %v35_v49 = vld [vmem:[%s3475_s2 + $0x60] sm:$0xff]  ;;  %v41_v52 = vld [vmem:[%s3475_s2 + $0x90] sm:$0xff] }
  0x10   :  { %2093 = vmatpush.xpose.msk.msrb.mxu1 %vm3479_vm0, %v43_v22  ;;  %v51_v53 = vld [vmem:[%s3475_s2 + $0xe0] sm:$0xff]  ;;  %v40_v54 = vld [vmem:[%s3475_s2 + $0x88] sm:$0xff]  ;;  %v50_v55 = vld [vmem:[%s3475_s2 + $0xd8] sm:$0xff] }
  0x11   :  { %2075 = vmatmul.msk.f32.gmra.mxu0 %vm3478_vm1, %v64_v6  ;;  %2096 = vmatpush.xpose.msk.msrb.mxu2 %vm3479_vm0, %v2668_v19  ;;  %v56_v6 = vld [vmem:[%s3475_s2 + $0x108] sm:$0xff] }
  0x12   :  { %2100 = vmatpush.xpose.msk.msrb.mxu3 %vm3479_vm0, %v2699_v24  ;;  %2104 = vmatpush.xpose.msk.msra.mxu0 %vm3479_vm0, %v2755_v33 }
  0x15   :  { %2097 = vmatpush.xpose.msk.msrb.mxu2 %vm3479_vm0, %v2675_v20 }
  0x16   :  { %2101 = vmatpush.xpose.msk.msrb.mxu3 %vm3479_vm0, %v2706_v25  ;;  %2105 = vmatpush.xpose.msk.msra.mxu0 %vm3479_vm0, %v2762_v34 }
  0x86   :  { %v90_v11 = vpop.f32.mrf.mxu0 }
  0x87   :  { %v2617_v12 = vadd.f32 %v2459_v10, %v90_v11  ;;  %v60_v11 = vld [vmem:[%s3475_s2 + $0x128] sm:$0xff] }
  0x89   :  { %106 = vrot.lane.b32.xlu2 %v2617_v12, %s2526_s10  ;;  %98 = vrot.lane.b32.xlu0 %v2617_v12, %s2527_s11 }
  0x8a   :  { %2078 = vmatmul.msk.f32.vlgmr.msra.gmra.mxu1 %vm3479_vm0, %v2617_v12 }
  0x8e   :  { %v93_v13 = vpop.f32.mrf.mxu0 }
  0x8f   :  { %v2624_v14 = vadd.f32 %v2459_v10, %v93_v13  ;;  %v61_v10 = vld [vmem:[%s3475_s2 + $0x130] sm:$0xff] }
  0x91   :  { %100 = vrot.lane.b32.xlu1 %v2624_v14, %s2527_s11  ;;  %2082 = vmatmul.msk.f32.vlgmr.msra.gmra.mxu2 %vm3479_vm0, %v2624_v14 }
  0x92   :  { %108 = vrot.lane.b32.xlu2 %v2624_v14, %s2526_s10  ;;  %104 = vrot.lane.b32.xlu0 %v2624_v14, %s2528_s1 }
  0x99   :  { %102 = vrot.lane.b32.xlu1 %v2617_v12, %s2528_s1 }
  0x9a   :  { %112 = vrot.lane.b32.xlu0 %v2624_v14, %s2529_s12 }
  0xa1   :  { %110 = vrot.lane.b32.xlu1 %v2617_v12, %s2529_s12 }
  0xe3   :  { %v2708_v26 = vpop.permute.xlu2 %106 }
  0xec   :  { %v2722_v29 = vpop.permute.xlu2 %108 }
  0xfb   :  { %v2690_v23 = vpop.permute.xlu0 %98 }
  0xfc   :  { %2086 = vmatmul.msk.f32.vlgmr.msra.gmra.mxu3 %vm3479_vm0, %v2690_v23  ;;  %114 = vrot.lane.b32.xlu2 %v2690_v23, %s2529_s12 }
 0x103   :  { %v2712_v27 = vpop.permute.xlu1 %100 }
 0x104   :  { %v2714_v28 = vpop.permute.xlu0 %104  ;;  %2090 = vmatmul.msk.f32.vlgmr.msrb.gmra.mxu0 %vm3479_vm0, %v2712_v27  ;;  %116 = vrot.lane.b32.xlu1 %v2712_v27, %s2529_s12 }
 0x105   :  { %120 = vrot.lane.b32.xlu0 %v2714_v28, %s2529_s12 }
 0x107   :  { %v154_v48 = vpop.f32.mrf.mxu1 }
 0x108   :  { %vm575_vm3 = vcmp.gt.f32.partialorder %v154_v48, 0.0 }
 0x109   :  { %v2140_v51 = vsel %vm575_vm3, 1.0, %v2530_v50 }
 0x10b   :  { %v2724_v30 = vpop.permute.xlu1 %102 }
 0x10c   :  { %v2726_v31 = vpop.permute.xlu0 %112  ;;  %124 = vrot.lane.b32.xlu1 %v2722_v29, %s2529_s12  ;;  %118 = vrot.lane.b32.xlu2 %v2724_v30, %s2529_s12 }
 0x10d   :  { %122 = vrot.lane.b32.xlu0 %v2708_v26, %s2529_s12  ;;  %2083 = vmatmul.msk.f32.gmra.mxu2 %vm3479_vm0, %v2726_v31 }
 0x10e   :  { %2112 = vmatpush.xpose.msk.msra.mxu2 %vm3479_vm0, %v2726_v31 }
 0x112   :  { %2113 = vmatpush.xpose.msk.msra.mxu2 %vm3479_vm0, %v2624_v14 }
 0x113   :  { %v2740_v32 = vpop.permute.xlu1 %110 }
 0x114   :  { %2079 = vmatmul.msk.f32.gmra.mxu1 %vm3479_vm0, %v2740_v32  ;;  %v187_v58 = vpop.f32.mrf.mxu2 }
 0x115   :  { %2098 = vmatmul.msk.f32.vlgmr.msrb.gmra.mxu2 %vm3479_vm0, %v2714_v28  ;;  %2108 = vmatpush.xpose.msk.msra.mxu1 %vm3479_vm0, %v2740_v32  ;;  %vm577_vm7 = vcmp.gt.f32.partialorder %v187_v58, 0.0 }
 0x116   :  { %v2142_v61 = vsel %vm577_vm7, 1.0, %v2530_v50 }
 0x119   :  { %2109 = vmatpush.xpose.msk.msra.mxu1 %vm3479_vm0, %v2617_v12 }
 0x11c   :  { %2094 = vmatmul.msk.f32.vlgmr.msrb.gmra.mxu1 %vm3479_vm0, %v2724_v30 }
 0x156   :  { %v2766_v35 = vpop.permute.xlu2 %114 }
 0x157   :  { %2087 = vmatmul.msk.f32.gmra.mxu3 %vm3479_vm0, %v2766_v35 }
 0x158   :  { %2116 = vmatpush.xpose.msk.msra.mxu3 %vm3479_vm0, %v2766_v35 }
 0x15c   :  { %2117 = vmatpush.xpose.msk.msra.mxu3 %vm3479_vm0, %v2690_v23 }
 0x15f   :  { %2102 = vmatmul.msk.f32.vlgmr.msrb.gmra.mxu3 %vm3479_vm0, %v2708_v26 }
 0x166   :  { %v2776_v36 = vpop.permute.xlu2 %118 }
 0x167   :  { %2095 = vmatmul.msk.f32.gmra.mxu1 %vm3479_vm0, %v2776_v36 }
 0x168   :  { %2124 = vmatpush.xpose.msk.msrb.mxu1 %vm3479_vm0, %v2776_v36 }
 0x16c   :  { %2125 = vmatpush.xpose.msk.msrb.mxu1 %vm3479_vm0, %v2724_v30 }
 0x16f   :  { %2110 = vmatmul.msk.f32.vlgmr.msra.gmra.mxu1 %vm3479_vm0, %v2596_v7  ;;  %v55_v7 = vld [vmem:[%s3475_s2 + $0x100] sm:$0xff] }
 0x170   :  { %2172 = vmatpush.msk.msra.mxu1 %vm678_vm2, %v26_v37 }
 0x172   :  { %697 = vmatpush.msra.mxu1 %v25_v38 }
 0x176   :  { %v2793_v39 = vpop.permute.xlu1 %116 }
 0x177   :  { %v2795_v40 = vpop.permute.xlu0 %120  ;;  %2091 = vmatmul.msk.f32.gmra.mxu0 %vm3479_vm0, %v2793_v39  ;;  %2111 = vmatmul.msk.f32.gmra.mxu1 %vm3479_vm0, %v2581_v4 }
 0x178   :  { %2099 = vmatmul.msk.f32.gmra.mxu2 %vm3479_vm0, %v2795_v40  ;;  %2120 = vmatpush.xpose.msk.msrb.mxu0 %vm3479_vm0, %v2793_v39 }
 0x179   :  { %2128 = vmatpush.xpose.msk.msrb.mxu2 %vm3479_vm0, %v2795_v40 }
 0x17c   :  { %2121 = vmatpush.xpose.msk.msrb.mxu0 %vm3479_vm0, %v2712_v27 }
 0x17d   :  { %2129 = vmatpush.xpose.msk.msrb.mxu2 %vm3479_vm0, %v2714_v28 }
 0x17e   :  { %v2811_v41 = vpop.permute.xlu1 %124 }
 0x17f   :  { %v2813_v42 = vpop.permute.xlu0 %122  ;;  %2106 = vmatmul.msk.f32.vlgmr.msra.gmra.mxu0 %vm3479_vm0, %v2722_v29  ;;  %2126 = vmatmul.msk.f32.vlgmr.msrb.gmra.mxu1 %vm3479_vm0, %v43_v22  ;;  %v220_v63 = vpop.f32.mrf.mxu3  ;;  %v2532_v22 = vmov 0  }
 0x180   :  { %2103 = vmatmul.msk.f32.gmra.mxu3 %vm3479_vm0, %v2813_v42  ;;  %2114 = vmatmul.msk.f32.vlgmr.msra.gmra.mxu2 %vm3479_vm0, %v2610_v9  ;;  %vm579_vm8 = vcmp.gt.f32.partialorder %v220_v63, 0.0 }
 0x181   :  { %2132 = vmatpush.xpose.msk.msrb.mxu3 %vm3479_vm0, %v2813_v42  ;;  %2136 = vmatpush.xpose.msk.msra.mxu0 %vm3479_vm0, %v2811_v41  ;;  %v2144_v0 = vsel %vm579_vm8, 1.0, %v2530_v50  ;;  %v253_v2 = vpop.f32.mrf.mxu0 }
 0x182   :  { %2175 = vmatpush.msk.msra.mxu2 %vm678_vm2, %v31_v43  ;;  %2184 = vmatpush.msk.msrb.mxu1 %vm678_vm2, %v46_v44  ;;  %vm581_vm10 = vcmp.gt.f32.partialorder %v253_v2, 0.0 }
 0x183   :  { %v2146_v4 = vsel %vm581_vm10, 1.0, %v2530_v50  ;;  %2395 = vset.pattern.permute.xlu2 %v2532_v22  ;;  %2398 = vset.pattern.permute.xlu0 %v2532_v22 }
 0x184   :  { %729 = vmatpush.msra.mxu2 %v30_v45  ;;  %825 = vmatpush.msrb.mxu1 %v45_v46 }
 0x185   :  { %2133 = vmatpush.xpose.msk.msrb.mxu3 %vm3479_vm0, %v2708_v26  ;;  %2137 = vmatpush.xpose.msk.msra.mxu0 %vm3479_vm0, %v2722_v29 }
 0x187   :  { %2107 = vmatmul.msk.f32.gmra.mxu0 %vm3479_vm0, %v2811_v41  ;;  %2127 = vmatmul.msk.f32.gmra.mxu1 %vm3479_vm0, %v2682_v21  ;;  %v2531_v21 = vmov 2  }
 0x188   :  { %2115 = vmatmul.msk.f32.gmra.mxu2 %vm3479_vm0, %v2603_v8  ;;  %2118 = vmatmul.msk.f32.vlgmr.msra.gmra.mxu3 %vm3479_vm0, %v2647_v16 }
 0x189   :  { %2178 = vmatpush.msk.msra.mxu3 %vm678_vm2, %v36_v47  ;;  %2397 = vset.pattern.permute.xlu1 %v2531_v21 }
 0x18b   :  { %761 = vmatpush.msra.mxu3 %v35_v49 }
 0x18f   :  { %2122 = vmatmul.msk.f32.vlgmr.msrb.gmra.mxu0 %vm3479_vm0, %v2661_v18  ;;  %2173 = vmatmul.msk.f32.vlgmr.msra.gmra.mxu1 %vm671_vm4, %v2140_v51 }
 0x190   :  { %2119 = vmatmul.msk.f32.gmra.mxu3 %vm3479_vm0, %v2640_v15  ;;  %2130 = vmatmul.msk.f32.vlgmr.msrb.gmra.mxu2 %vm3479_vm0, %v2675_v20  ;;  %v190_v62 = vpop.f32.mrf.mxu2 }
 0x191   :  { %v157_v56 = vpop.f32.mrf.mxu1  ;;  %2181 = vmatpush.msk.msrb.mxu0 %vm678_vm2, %v41_v52  ;;  %2187 = vmatpush.msk.msrb.mxu2 %vm678_vm2, %v51_v53  ;;  %vm578_vm9 = vcmp.gt.f32.partialorder %v190_v62, 0.0 }
 0x192   :  { %vm576_vm5 = vcmp.gt.f32.partialorder %v157_v56, 0.0  ;;  %v2143_v1 = vsel %vm578_vm9, 1.0, %v2530_v50 }
 0x193   :  { %793 = vmatpush.msrb.mxu0 %v40_v54  ;;  %857 = vmatpush.msrb.mxu2 %v50_v55  ;;  %v2141_v57 = vsel %vm576_vm5, 1.0, %v2530_v50 }
 0x197   :  { %2123 = vmatmul.msk.f32.gmra.mxu0 %vm3479_vm0, %v2654_v17  ;;  %2174 = vmatmul.msk.f32.gmra.mxu1 %vm671_vm4, %v2141_v57 }
 0x198   :  { %2131 = vmatmul.msk.f32.gmra.mxu2 %vm3479_vm0, %v2668_v19  ;;  %2134 = vmatmul.msk.f32.vlgmr.msrb.gmra.mxu3 %vm3479_vm0, %v2706_v25  ;;  %v319_v3 = vpop.f32.mrf.mxu2 }
 0x199   :  { %v286_v59 = vpop.f32.mrf.mxu1  ;;  %vm585_vm11 = vcmp.gt.f32.partialorder %v319_v3, 0.0  ;;  %2190 = vmatpush.msk.msrb.mxu3 %vm678_vm2, %v56_v6 }
 0x19a   :  { %vm583_vm6 = vcmp.gt.f32.partialorder %v286_v59, 0.0  ;;  %v2150_v5 = vsel %vm585_vm11, 1.0, %v2530_v50 }
 0x19b   :  { %v2148_v60 = vsel %vm583_vm6, 1.0, %v2530_v50  ;;  %889 = vmatpush.msrb.mxu3 %v55_v7 }
 0x19f   :  { %2138 = vmatmul.msk.f32.vlgmr.msra.gmra.mxu0 %vm3479_vm0, %v2762_v34  ;;  %2185 = vmatmul.msk.f32.vlgmr.msrb.gmra.mxu1 %vm671_vm4, %v2148_v60  ;;  %v2533_v34 = vmov 1.0   ;;  %v32_v60 = vld [vmem:[%s3475_s2 + $0x48] sm:$0xff] }
 0x1a0   :  { %2135 = vmatmul.msk.f32.gmra.mxu3 %vm3479_vm0, %v2699_v24  ;;  %2176 = vmatmul.msk.f32.vlgmr.msra.gmra.mxu2 %vm671_vm4, %v2142_v61 }
 0x1a1   :  { %2193 = vmatpush.msk.msra.mxu0 %vm678_vm2, %v61_v10  ;;  %v47_v10 = vld [vmem:[%s3475_s2 + $0xc0] sm:$0xff] }
 0x1a3   :  { %921 = vmatpush.msra.mxu0 %v60_v11 }
 0x1a7   :  { %2139 = vmatmul.msk.f32.gmra.mxu0 %vm3479_vm0, %v2755_v33  ;;  %v27_v33 = vld [vmem:[%s3475_s2 + $0x20] sm:$0xff] }
 0x1a8   :  { %2177 = vmatmul.msk.f32.gmra.mxu2 %vm671_vm4, %v2143_v1  ;;  %2179 = vmatmul.msk.f32.vlgmr.msra.gmra.mxu3 %vm671_vm4, %v2144_v0 }
 0x1af   :  { %2182 = vmatmul.msk.f32.vlgmr.msrb.gmra.mxu0 %vm671_vm4, %v2146_v4 }
 0x1b0   :  { %2188 = vmatmul.msk.f32.vlgmr.msrb.gmra.mxu2 %vm671_vm4, %v2150_v5 }
 0x1da   :  { %v223_v8 = vpop.f32.mrf.mxu3 }
 0x1db   :  { %vm580_vm12 = vcmp.gt.f32.partialorder %v223_v8, 0.0 }
 0x1dc   :  { %v2145_v9 = vsel %vm580_vm12, 1.0, %v2530_v50 }
 0x1dd   :  { %2180 = vmatmul.msk.f32.gmra.mxu3 %vm671_vm4, %v2145_v9  ;;  %v37_v9 = vld [vmem:[%s3475_s2 + $0x70] sm:$0xff] }
 0x1e2   :  { %v352_v13 = vpop.f32.mrf.mxu3 }
 0x1e3   :  { %vm587_vm13 = vcmp.gt.f32.partialorder %v352_v13, 0.0  ;;  %v42_v13 = vld [vmem:[%s3475_s2 + $0x98] sm:$0xff] }
 0x1e4   :  { %v2152_v15 = vsel %vm587_vm13, 1.0, %v2530_v50  ;;  %v289_v16 = vpop.f32.mrf.mxu1 }
 0x1e5   :  { %vm584_vm14 = vcmp.gt.f32.partialorder %v289_v16, 0.0  ;;  %2191 = vmatmul.msk.f32.vlgmr.msrb.gmra.mxu3 %vm671_vm4, %v2152_v15 }
 0x1e6   :  { %v2149_v17 = vsel %vm584_vm14, 1.0, %v2530_v50 }
 0x1e7   :  { %2186 = vmatmul.msk.f32.gmra.mxu1 %vm671_vm4, %v2149_v17 }
 0x1ec   :  { %v408_v18 = vpop.f32.mrf.mxu1 }
 0x1ed   :  { %vm623_vm5 = vcmp.gt.f32.partialorder %v408_v18, 0.0 }
 0x1f4   :  { %v256_v19 = vpop.f32.mrf.mxu0  ;;  %v411_v20 = vpop.f32.mrf.mxu1 }
 0x1f5   :  { %vm582_vm15 = vcmp.gt.f32.partialorder %v256_v19, 0.0  ;;  %vm624_vm3 = vcmp.gt.f32.partialorder %v411_v20, 0.0 }
 0x1f6   :  { %v2147_v24 = vsel %vm582_vm15, 1.0, %v2530_v50  ;;  %v2157_v25 = vsel %vm624_vm3, 1.0, %v2530_v50 }
 0x1f7   :  { %2183 = vmatmul.msk.f32.gmra.mxu0 %vm671_vm4, %v2147_v24  ;;  %2196 = vmatpush.msk.msra.mxu1 %vm678_vm2, %v2157_v25  ;;  %v2534_v24 = vmov 1   ;;  %v52_v25 = vld [vmem:[%s3475_s2 + $0xe8] sm:$0xff] }
 0x1f9   :  { %2197 = vmatpush.msk.msra.mxu1 %vm623_vm5, %v2533_v34 }
 0x1fa   :  { %2198 = vmatmul.msk.f32.vlgmr.msra.gmra.mxu1 %vm671_vm4, %v27_v33 }
 0x1fb   :  { %v322_v37 = vpop.f32.mrf.mxu2 }
 0x1fc   :  { %vm586_vm6 = vcmp.gt.f32.partialorder %v322_v37, 0.0  ;;  %v385_v38 = vpop.f32.mrf.mxu0  ;;  %v500_v43 = vpop.f32.mrf.mxu1 }
 0x1fd   :  { %v2151_v44 = vsel %vm586_vm6, 1.0, %v2530_v50  ;;  %vm589_vm7 = vcmp.gt.f32.partialorder %v385_v38, 0.0  ;;  %vm631_vm14 = vcmp.gt.f32.partialorder %v500_v43, 0.0 }
 0x1fe   :  { %v2154_v45 = vsel %vm589_vm7, 1.0, %v2530_v50  ;;  %2189 = vmatmul.msk.f32.gmra.mxu2 %vm671_vm4, %v2151_v44 }
 0x1ff   :  { %2194 = vmatmul.msk.f32.vlgmr.msra.gmra.mxu0 %vm671_vm4, %v2154_v45 }
 0x203   :  { %v355_v46 = vpop.f32.mrf.mxu3  ;;  %v431_v47 = vpop.f32.mrf.mxu2 }
 0x204   :  { %vm588_vm8 = vcmp.gt.f32.partialorder %v355_v46, 0.0  ;;  %v388_v48 = vpop.f32.mrf.mxu0  ;;  %v503_v49 = vpop.f32.mrf.mxu1  ;;  %vm625_vm12 = vcmp.gt.f32.partialorder %v431_v47, 0.0 }
 0x205   :  { %v2153_v51 = vsel %vm588_vm8, 1.0, %v2530_v50  ;;  %vm590_vm9 = vcmp.gt.f32.partialorder %v388_v48, 0.0  ;;  %vm632_vm10 = vcmp.gt.f32.partialorder %v503_v49, 0.0  ;;  %v57_v48 = vld [vmem:[%s3475_s2 + $0x110] sm:$0xff] }
 0x206   :  { %v2155_v52 = vsel %vm590_vm9, 1.0, %v2530_v50  ;;  %2192 = vmatmul.msk.f32.gmra.mxu3 %vm671_vm4, %v2153_v51  ;;  %v2165_v61 = vsel %vm632_vm10, 1.0, %v2530_v50 }
 0x207   :  { %2195 = vmatmul.msk.f32.gmra.mxu0 %vm671_vm4, %v2155_v52 }
 0x20b   :  { %v434_v53 = vpop.f32.mrf.mxu2  ;;  %v454_v54 = vpop.f32.mrf.mxu3 }
 0x20c   :  { %vm626_vm11 = vcmp.gt.f32.partialorder %v434_v53, 0.0  ;;  %v477_v55 = vpop.f32.mrf.mxu0  ;;  %v699_v56 = vpop.f32.mrf.mxu1  ;;  %vm627_vm15 = vcmp.gt.f32.partialorder %v454_v54, 0.0 }
 0x20d   :  { %v2159_v57 = vsel %vm626_vm11, 1.0, %v2530_v50  ;;  %vm2260_vm13 = vcmp.lt.s32.totalorder %v699_v56, 0  ;;  %v2261_v58 = vceil.f32 %v699_v56  ;;  %v2262_v59 = vfloor.f32 %v699_v56 }
 0x20e   :  { %2199 = vmatpush.msk.msra.mxu2 %vm678_vm2, %v2159_v57  ;;  %vm629_vm7 = vcmp.gt.f32.partialorder %v477_v55, 0.0 }
 0x20f   :  { %v2263_v62 = vsel %vm2260_vm13, %v2261_v58, %v2262_v59 }
 0x210   :  { %2200 = vmatpush.msk.msra.mxu2 %vm625_vm12, %v2533_v34  ;;  %v2264_v63 = vcvt.f32.s32 %v2263_v62 }
 0x211   :  { %2201 = vmatmul.msk.f32.vlgmr.msra.gmra.mxu2 %vm671_vm4, %v32_v60 }
 0x212   :  { %2208 = vmatpush.msk.msrb.mxu2 %vm678_vm2, %v2165_v61  ;;  %v1153_v2 = vand.u32 15, %v2264_v63 }
 0x213   :  { %v457_v0 = vpop.f32.mrf.mxu3  ;;  %v523_v1 = vpop.f32.mrf.mxu2 }
 0x214   :  { %vm628_vm3 = vcmp.gt.f32.partialorder %v457_v0, 0.0  ;;  %2209 = vmatpush.msk.msrb.mxu2 %vm631_vm14, %v2533_v34  ;;  %v480_v3 = vpop.f32.mrf.mxu0  ;;  %v702_v4 = vpop.f32.mrf.mxu1  ;;  %1346 = vperm.xlu1 %2397, %v1153_v2   ;;  %vm633_vm9 = vcmp.gt.f32.partialorder %v523_v1, 0.0 }
 0x215   :  { %v2161_v5 = vsel %vm628_vm3, 1.0, %v2530_v50  ;;  %vm630_vm5 = vcmp.gt.f32.partialorder %v480_v3, 0.0  ;;  %vm2265_vm6 = vcmp.lt.s32.totalorder %v702_v4, 0  ;;  %v2266_v6 = vceil.f32 %v702_v4  ;;  %1186 = vperm.xlu2 %2395, %v1153_v2  }
 0x216   :  { %2220 = vmatpush.xpose.msk.msra.mxu2 %vm3479_vm0, %v2740_v32  ;;  %v2163_v7 = vsel %vm630_vm5, 1.0, %v2530_v50  ;;  %v2267_v8 = vfloor.f32 %v702_v4  ;;  %2202 = vmatpush.msk.msra.mxu3 %vm678_vm2, %v2161_v5 }
 0x217   :  { %2205 = vmatpush.msk.msrb.mxu1 %vm678_vm2, %v2163_v7 }
 0x218   :  { %2203 = vmatpush.msk.msra.mxu3 %vm627_vm15, %v2533_v34  ;;  %v2268_v11 = vsel %vm2265_vm6, %v2266_v6, %v2267_v8 }
 0x219   :  { %2204 = vmatmul.msk.f32.vlgmr.msra.gmra.mxu3 %vm671_vm4, %v37_v9  ;;  %v2269_v15 = vcvt.f32.s32 %v2268_v11  ;;  %2210 = vmatmul.msk.f32.vlgmr.msrb.gmra.mxu2 %vm671_vm4, %v47_v10 }
 0x21a   :  { %2221 = vmatpush.xpose.msk.msra.mxu2 %vm3479_vm0, %v2617_v12  ;;  %2206 = vmatpush.msk.msrb.mxu1 %vm629_vm7, %v2533_v34 }
 0x21b   :  { %v526_v16 = vpop.f32.mrf.mxu2  ;;  %v546_v17 = vpop.f32.mrf.mxu3  ;;  %v1154_v18 = vand.u32 15, %v2269_v15  ;;  %2207 = vmatmul.msk.f32.vlgmr.msrb.gmra.mxu1 %vm671_vm4, %v42_v13 }
 0x21c   :  { %vm634_vm8 = vcmp.gt.f32.partialorder %v526_v16, 0.0  ;;  %v569_v19 = vpop.f32.mrf.mxu0  ;;  %vm635_vm12 = vcmp.gt.f32.partialorder %v546_v17, 0.0  ;;  %v827_v45 = vpop.f32.mrf.mxu1 }
 0x21d   :  { %v2167_v20 = vsel %vm634_vm8, 1.0, %v2530_v50  ;;  %1349 = vperm.xlu1 %2397, %v1154_v18   ;;  %1189 = vperm.xlu0 %2398, %v1154_v18   ;;  %vm637_vm14 = vcmp.gt.f32.partialorder %v569_v19, 0.0  ;;  %v2301_v52 = vceil.f32 %v827_v45  ;;  %v2302_v53 = vfloor.f32 %v827_v45 }
 0x21e   :  { %2236 = vmatpush.xpose.msk.msrb.mxu2 %vm3479_vm0, %v2776_v36  ;;  %2396 = vset.pattern.permute.xlu2 %v2534_v24  ;;  %vm2300_vm15 = vcmp.lt.s32.totalorder %v827_v45, 0 }
 0x21f   :  { %2211 = vmatpush.msk.msrb.mxu3 %vm678_vm2, %v2167_v20  ;;  %1258 = vperm.xlu2 %2396, %v1153_v2   ;;  %v2303_v55 = vsel %vm2300_vm15, %v2301_v52, %v2302_v53 }
 0x221   :  { %2212 = vmatpush.msk.msrb.mxu3 %vm633_vm9, %v2533_v34  ;;  %2222 = vmatmul.msk.f32.vlgmr.msra.gmra.mxu2 %vm3479_vm0, %v2617_v12 }
 0x222   :  { %2237 = vmatpush.xpose.msk.msrb.mxu2 %vm3479_vm0, %v2724_v30  ;;  %2213 = vmatmul.msk.f32.vlgmr.msrb.gmra.mxu3 %vm671_vm4, %v52_v25 }
 0x223   :  { %2224 = vmatpush.xpose.msk.msra.mxu3 %vm3479_vm0, %v2726_v31  ;;  %v549_v33 = vpop.f32.mrf.mxu3  ;;  %v731_v37 = vpop.f32.mrf.mxu2 }
 0x224   :  { %vm636_vm10 = vcmp.gt.f32.partialorder %v549_v33, 0.0  ;;  %vm2270_vm11 = vcmp.lt.s32.totalorder %v731_v37, 0  ;;  %v2271_v38 = vceil.f32 %v731_v37  ;;  %v2272_v43 = vfloor.f32 %v731_v37  ;;  %v572_v44 = vpop.f32.mrf.mxu0 }
 0x225   :  { %v2169_v46 = vsel %vm636_vm10, 1.0, %v2530_v50  ;;  %vm638_vm13 = vcmp.gt.f32.partialorder %v572_v44, 0.0  ;;  %2399 = vset.pattern.permute.xlu1 %v2532_v22  ;;  %2400 = vset.pattern.permute.xlu0 %v2534_v24 }
 0x226   :  { %v2171_v47 = vsel %vm638_vm13, 1.0, %v2530_v50  ;;  %2214 = vmatpush.msk.msrb.mxu0 %vm678_vm2, %v2169_v46  ;;  %v2273_v49 = vsel %vm2270_vm11, %v2271_v38, %v2272_v43  ;;  %v62_v50 = vld [vmem:[%s3475_s2 + $0x138] sm:$0xff] }
 0x227   :  { %2225 = vmatpush.xpose.msk.msra.mxu3 %vm3479_vm0, %v2624_v14  ;;  %1261 = vperm.xlu2 %2396, %v1154_v18   ;;  %v2274_v51 = vcvt.f32.s32 %v2273_v49 }
 0x228   :  { %2215 = vmatpush.msk.msrb.mxu0 %vm635_vm12, %v2533_v34  ;;  %2217 = vmatpush.msk.msra.mxu1 %vm678_vm2, %v2171_v47 }
 0x229   :  { %2216 = vmatmul.msk.f32.vlgmr.msrb.gmra.mxu0 %vm671_vm4, %v57_v48  ;;  %v1155_v54 = vand.u32 15, %v2274_v51  ;;  %2223 = vmatmul.msk.f32.gmra.mxu2 %vm3479_vm0, %v2740_v32 }
 0x22a   :  { %2226 = vmatmul.msk.f32.vlgmr.msra.gmra.mxu3 %vm3479_vm0, %v2624_v14  ;;  %2228 = vmatpush.xpose.msk.msra.mxu0 %vm3479_vm0, %v2766_v35 }
 0x22b   :  { %2240 = vmatpush.xpose.msk.msrb.mxu3 %vm3479_vm0, %v2795_v40  ;;  %2218 = vmatpush.msk.msra.mxu1 %vm637_vm14, %v2533_v34  ;;  %v763_v56 = vpop.f32.mrf.mxu3  ;;  %v734_v32 = vpop.f32.mrf.mxu2  ;;  %v2304_v34 = vcvt.f32.s32 %v2303_v55 }
 0x22c   :  { %2219 = vmatmul.msk.f32.vlgmr.msra.gmra.mxu1 %vm671_vm4, %v62_v50  ;;  %1192 = vperm.xlu1 %2399, %v1155_v54   ;;  %v2281_v57 = vceil.f32 %v763_v56  ;;  %v2282_v58 = vfloor.f32 %v763_v56  ;;  %v2276_v59 = vceil.f32 %v734_v32  ;;  %v2277_v60 = vfloor.f32 %v734_v32  ;;  %v795_v63 = vpop.f32.mrf.mxu0 }
 0x22d   :  { %2232 = vmatpush.xpose.msk.msrb.mxu1 %vm3479_vm0, %v2793_v39  ;;  %1264 = vperm.xlu0 %2400, %v1155_v54   ;;  %vm2280_vm2 = vcmp.lt.s32.totalorder %v763_v56, 0  ;;  %vm2275_vm4 = vcmp.lt.s32.totalorder %v734_v32, 0  ;;  %v1161_v61 = vand.u32 15, %v2304_v34  ;;  %v2291_v2 = vceil.f32 %v795_v63 }
 0x22e   :  { %2229 = vmatpush.xpose.msk.msra.mxu0 %vm3479_vm0, %v2690_v23  ;;  %v2278_v62 = vsel %vm2275_vm4, %v2276_v59, %v2277_v60  ;;  %v2292_v3 = vfloor.f32 %v795_v63  ;;  %vm2290_vm3 = vcmp.lt.s32.totalorder %v795_v63, 0 }
 0x22f   :  { %2241 = vmatpush.xpose.msk.msrb.mxu3 %vm3479_vm0, %v2714_v28  ;;  %2401 = vset.pattern.permute.xlu2 %v2531_v21  ;;  %v2279_v1 = vcvt.f32.s32 %v2278_v62 }
 0x230   :  { %1352 = vperm.xlu2 %2401, %v1155_v54   ;;  %v2293_v6 = vsel %vm2290_vm3, %v2291_v2, %v2292_v3 }
 0x231   :  { %2233 = vmatpush.xpose.msk.msrb.mxu1 %vm3479_vm0, %v2712_v27  ;;  %2230 = vmatmul.msk.f32.vlgmr.msra.gmra.mxu0 %vm3479_vm0, %v2690_v23  ;;  %v1156_v5 = vand.u32 15, %v2279_v1 }
 0x232   :  { %2244 = vmatpush.xpose.msk.msrb.mxu0 %vm3479_vm0, %v2813_v42  ;;  %2227 = vmatmul.msk.f32.gmra.mxu3 %vm3479_vm0, %v2726_v31  ;;  %v2283_v31 = vsel %vm2280_vm2, %v2281_v57, %v2282_v58 }
 0x233   :  { %2238 = vmatmul.msk.f32.vlgmr.msrb.gmra.mxu2 %vm3479_vm0, %v2724_v30  ;;  %v2284_v0 = vcvt.f32.s32 %v2283_v31  ;;  %v859_v7 = vpop.f32.mrf.mxu2 }
 0x234   :  { %2234 = vmatmul.msk.f32.vlgmr.msrb.gmra.mxu1 %vm3479_vm0, %v2712_v27  ;;  %2404 = vset.pattern.permute.xlu1 %v2531_v21  ;;  %vm2310_vm5 = vcmp.lt.s32.totalorder %v859_v7, 0 }
 0x235   :  { %2248 = vmatpush.xpose.msk.msra.mxu1 %vm3479_vm0, %v2811_v41  ;;  %2402 = vset.pattern.permute.xlu0 %v2532_v22  ;;  %v1157_v4 = vand.u32 15, %v2284_v0 }
 0x236   :  { %2245 = vmatpush.xpose.msk.msrb.mxu0 %vm3479_vm0, %v2708_v26  ;;  %1370 = vperm.xlu1 %2404, %v1161_v61  }
 0x237   :  { %1210 = vperm.xlu0 %2402, %v1161_v61  }
 0x238   :  { %2403 = vset.pattern.permute.xlu2 %v2534_v24 }
 0x239   :  { %2249 = vmatpush.xpose.msk.msra.mxu1 %vm3479_vm0, %v2722_v29  ;;  %1282 = vperm.xlu2 %2403, %v1161_v61  }
 0x23a   :  { %2242 = vmatmul.msk.f32.vlgmr.msrb.gmra.mxu3 %vm3479_vm0, %v2714_v28  ;;  %2231 = vmatmul.msk.f32.gmra.mxu0 %vm3479_vm0, %v2766_v35  ;;  %v2294_v35 = vcvt.f32.s32 %v2293_v6 }
 0x23b   :  { %2239 = vmatmul.msk.f32.gmra.mxu2 %vm3479_vm0, %v2776_v36  ;;  %v2311_v36 = vceil.f32 %v859_v7 }
 0x23c   :  { %2235 = vmatmul.msk.f32.gmra.mxu1 %vm3479_vm0, %v2793_v39  ;;  %v2312_v39 = vfloor.f32 %v859_v7  ;;  %v1159_v8 = vand.u32 15, %v2294_v35 }
 0x23e   :  { %2406 = vset.pattern.permute.xlu1 %v2532_v22  ;;  %v2313_v9 = vsel %vm2310_vm5, %v2311_v36, %v2312_v39 }
 0x23f   :  { %2409 = vset.pattern.permute.xlu0 %v2534_v24  ;;  %1198 = vperm.xlu1 %2406, %v1157_v4  }
 0x240   :  { %1267 = vperm.xlu0 %2409, %v1156_v5  }
 0x241   :  { %2405 = vset.pattern.permute.xlu2 %v2532_v22 }
 0x242   :  { %2243 = vmatmul.msk.f32.gmra.mxu3 %vm3479_vm0, %v2795_v40  ;;  %2246 = vmatmul.msk.f32.vlgmr.msrb.gmra.mxu0 %vm3479_vm0, %v2708_v26  ;;  %v2314_v40 = vcvt.f32.s32 %v2313_v9 }
 0x243   :  { %1195 = vperm.xlu2 %2405, %v1156_v5  }
 0x244   :  { %2250 = vmatmul.msk.f32.vlgmr.msra.gmra.mxu1 %vm3479_vm0, %v2722_v29  ;;  %v1163_v10 = vand.u32 15, %v2314_v40 }
 0x247   :  { %2407 = vset.pattern.permute.xlu1 %v2534_v24 }
 0x248   :  { %2410 = vset.pattern.permute.xlu0 %v2532_v22  ;;  %1270 = vperm.xlu1 %2407, %v1157_v4  }
 0x249   :  { %1204 = vperm.xlu0 %2410, %v1159_v8  }
 0x24a   :  { %2247 = vmatmul.msk.f32.gmra.mxu0 %vm3479_vm0, %v2813_v42 }
 0x24b   :  { %2408 = vset.pattern.permute.xlu2 %v2531_v21 }
 0x24c   :  { %1358 = vperm.xlu2 %2408, %v1157_v4   ;;  %2251 = vmatmul.msk.f32.gmra.mxu1 %vm3479_vm0, %v2811_v41 }
 0x250   :  { %2413 = vset.pattern.permute.xlu1 %v2532_v22 }
 0x251   :  { %2412 = vset.pattern.permute.xlu0 %v2531_v21  ;;  %1216 = vperm.xlu1 %2413, %v1163_v10  }
 0x252   :  { %1364 = vperm.xlu0 %2412, %v1159_v8  }
 0x254   :  { %1355 = vperm.xlu2 %2408, %v1156_v5  }
 0x259   :  { %2414 = vset.pattern.permute.xlu1 %v2534_v24 }
 0x25a   :  { %1288 = vperm.xlu1 %2414, %v1163_v10   ;;  %2417 = vset.pattern.permute.xlu0 %v2534_v24 }
 0x25c   :  { %2411 = vset.pattern.permute.xlu2 %v2534_v24 }
 0x25d   :  { %1276 = vperm.xlu2 %2411, %v1159_v8  }
 0x260   :  { %v766_v42 = vpop.f32.mrf.mxu3 }
 0x261   :  { %v2286_v11 = vceil.f32 %v766_v42  ;;  %v2287_v13 = vfloor.f32 %v766_v42  ;;  %vm2285_vm6 = vcmp.lt.s32.totalorder %v766_v42, 0 }
 0x262   :  { %2416 = vset.pattern.permute.xlu1 %v2532_v22 }
 0x263   :  { %v2288_v17 = vsel %vm2285_vm6, %v2286_v11, %v2287_v13 }
 0x264   :  { %v830_v41 = vpop.f32.mrf.mxu1  ;;  %v2289_v19 = vcvt.f32.s32 %v2288_v17 }
 0x265   :  { %2415 = vset.pattern.permute.xlu2 %v2531_v21  ;;  %vm2305_vm7 = vcmp.lt.s32.totalorder %v830_v41, 0  ;;  %v2306_v15 = vceil.f32 %v830_v41  ;;  %v2307_v16 = vfloor.f32 %v830_v41 }
 0x266   :  { %1376 = vperm.xlu2 %2415, %v1163_v10   ;;  %v1158_v33 = vand.u32 15, %v2289_v19 }
 0x267   :  { %v2308_v18 = vsel %vm2305_vm7, %v2306_v15, %v2307_v16 }
 0x268   :  { %v2309_v20 = vcvt.f32.s32 %v2308_v18  ;;  %v891_v34 = vpop.f32.mrf.mxu3 }
 0x269   :  { %v2321_v59 = vceil.f32 %v891_v34  ;;  %v2322_v60 = vfloor.f32 %v891_v34  ;;  %vm2320_vm11 = vcmp.lt.s32.totalorder %v891_v34, 0 }
 0x26a   :  { %v1162_v25 = vand.u32 15, %v2309_v20 }
 0x26b   :  { %v2323_v0 = vsel %vm2320_vm11, %v2321_v59, %v2322_v60 }
 0x26c   :  { %1285 = vperm.xlu0 %2417, %v1162_v25   ;;  %1213 = vperm.xlu1 %2416, %v1162_v25   ;;  %v2324_v3 = vcvt.f32.s32 %v2323_v0 }
 0x26e   :  { %2421 = vset.pattern.permute.xlu2 %v2532_v22  ;;  %v1165_v35 = vand.u32 15, %v2324_v3 }
 0x26f   :  { %1201 = vperm.xlu2 %2421, %v1158_v33   ;;  %v3083_v37 = vpop.permute.xlu2 %1186 }
 0x274   :  { %v798_v38 = vpop.f32.mrf.mxu0  ;;  %2418 = vset.pattern.permute.xlu1 %v2531_v21 }
 0x275   :  { %vm2295_vm8 = vcmp.lt.s32.totalorder %v798_v38, 0  ;;  %v2296_v43 = vceil.f32 %v798_v38  ;;  %v2297_v44 = vfloor.f32 %v798_v38  ;;  %1373 = vperm.xlu1 %2418, %v1162_v25  }
 0x277   :  { %2422 = vset.pattern.permute.xlu2 %v2534_v24  ;;  %v952_v45 = vpop.f32.mrf.mxu1  ;;  %v2298_v46 = vsel %vm2295_vm8, %v2296_v43, %v2297_v44 }
 0x278   :  { %1273 = vperm.xlu2 %2422, %v1158_v33   ;;  %vm2340_vm9 = vcmp.lt.s32.totalorder %v952_v45, 0  ;;  %v2341_v47 = vceil.f32 %v952_v45  ;;  %v2342_v48 = vfloor.f32 %v952_v45  ;;  %v2299_v49 = vcvt.f32.s32 %v2298_v46 }
 0x279   :  { %v3087_v51 = vpop.permute.xlu2 %1258 }
 0x27a   :  { %v2343_v52 = vsel %vm2340_vm9, %v2341_v47, %v2342_v48  ;;  %v1160_v53 = vand.u32 15, %v2299_v49 }
 0x27b   :  { %v2344_v50 = vcvt.f32.s32 %v2343_v52 }
 0x27c   :  { %v923_v54 = vpop.f32.mrf.mxu0  ;;  %1279 = vperm.xlu0 %2417, %v1160_v53  }
 0x27d   :  { %v3089_v55 = vand.u32 15, %v2344_v50  ;;  %vm2330_vm10 = vcmp.lt.s32.totalorder %v923_v54, 0  ;;  %v2331_v56 = vceil.f32 %v923_v54  ;;  %v2332_v32 = vfloor.f32 %v923_v54  ;;  %2419 = vset.pattern.permute.xlu1 %v2532_v22 }
 0x27e   :  { %1207 = vperm.xlu1 %2419, %v1160_v53  }
 0x27f   :  { %v1305_v57 = vperm.slane %v3089_v55, 1  ;;  %v2333_v58 = vsel %vm2330_vm10, %v2331_v56, %v2332_v32  ;;  %v1393_v8 = vperm.slane %v3089_v55, 2  ;;  %v1233_v9 = vperm.slane %v3089_v55, 0 }
 0x280   :  { %2423 = vset.pattern.permute.xlu2 %v2531_v21  ;;  %v2334_v31 = vcvt.f32.s32 %v2333_v58 }
 0x281   :  { %1361 = vperm.xlu2 %2423, %v1158_v33   ;;  %v1262_v61 = vpop.permute.xlu2 %1261  ;;  %v862_v4 = vpop.f32.mrf.mxu2  ;;  %vm1241_vm9 = vcmp.eq.s32.totalorder %v3083_v37, %v1233_v9  ;;  %vm1313_vm10 = vcmp.eq.s32.totalorder %v3087_v51, %v1305_v57 }
 0x282   :  { %vm3096_vm12 = vcmp.eq.s32.totalorder %v1262_v61, %v1305_v57  ;;  %v1167_v63 = vand.u32 15, %v2334_v31  ;;  %v2316_v36 = vceil.f32 %v862_v4  ;;  %v2317_v39 = vfloor.f32 %v862_v4 }
 0x283   :  { %vm2315_vm14 = vcmp.lt.s32.totalorder %v862_v4, 0 }
 0x284   :  { %2420 = vset.pattern.permute.xlu0 %v2531_v21  ;;  %v926_v1 = vpop.f32.mrf.mxu0  ;;  %v2318_v13 = vsel %vm2315_vm14, %v2316_v36, %v2317_v39 }
 0x285   :  { %1367 = vperm.xlu0 %2420, %v1160_v53   ;;  %v2336_v5 = vceil.f32 %v926_v1  ;;  %v2337_v6 = vfloor.f32 %v926_v1  ;;  %vm2335_vm13 = vcmp.lt.s32.totalorder %v926_v1, 0  ;;  %v2319_v18 = vcvt.f32.s32 %v2318_v13 }
 0x286   :  { %2425 = vset.pattern.permute.xlu1 %v2534_v24  ;;  %v3102_v2 = vpop.permute.xlu1 %1346 }
 0x287   :  { %1300 = vperm.xlu1 %2425, %v1167_v63   ;;  %v2338_v40 = vsel %vm2335_vm13, %v2336_v5, %v2337_v6  ;;  %v1164_v43 = vand.u32 15, %v2319_v18  ;;  %vm1401_vm11 = vcmp.eq.s32.totalorder %v3102_v2, %v1393_v8 }
 0x288   :  { %v2339_v11 = vcvt.f32.s32 %v2338_v40 }
 0x289   :  { %2424 = vset.pattern.permute.xlu2 %v2532_v22  ;;  %v894_v16 = vpop.f32.mrf.mxu3 }
 0x28a   :  { %1228 = vperm.xlu2 %2424, %v1167_v63   ;;  %v3105_v7 = vpop.permute.xlu2 %1352  ;;  %v3120_v25 = vand.u32 15, %v2339_v11  ;;  %vm2325_vm6 = vcmp.lt.s32.totalorder %v894_v16, 0  ;;  %v2326_v48 = vceil.f32 %v894_v16  ;;  %v2327_v49 = vfloor.f32 %v894_v16 }
 0x28c   :  { %v2328_v58 = vsel %vm2325_vm6, %v2326_v48, %v2327_v49 }
 0x28d   :  { %2428 = vset.pattern.permute.xlu0 %v2534_v24  ;;  %v2329_v61 = vcvt.f32.s32 %v2328_v58 }
 0x28e   :  { %1294 = vperm.xlu0 %2428, %v1165_v35  }
 0x28f   :  { %v1350_v10 = vpop.permute.xlu1 %1349  ;;  %v1190_v42 = vpop.permute.xlu0 %1189  ;;  %2426 = vset.pattern.permute.xlu1 %v2531_v21 }
 0x290   :  { %vm1402_vm15 = vcmp.eq.s32.totalorder %v1350_v10, %v1393_v8  ;;  %vm1242_vm2 = vcmp.eq.s32.totalorder %v1190_v42, %v1233_v9  ;;  %1388 = vperm.xlu1 %2426, %v1167_v63   ;;  %v3148_v63 = vand.u32 15, %v2329_v61 }
 0x291   :  { %vm1330_vm4 = vmor %vm1242_vm2, %vm3096_vm12 }
 0x292   :  { %2429 = vset.pattern.permute.xlu2 %v2531_v21  ;;  %vm3114_vm3 = vmor %vm1330_vm4, %vm1402_vm15 }
 0x293   :  { %1382 = vperm.xlu2 %2429, %v1165_v35   ;;  %v3118_v15 = vpop.permute.xlu2 %1282  ;;  %vm1329_vm12 = vmor %vm1241_vm9, %vm1313_vm10 }
 0x294   :  { %v978_v17 = vpop.f32.mrf.mxu2  ;;  %vm1417_vm13 = vmor %vm1329_vm12, %vm1401_vm11 }
 0x295   :  { %vm2345_vm5 = vcmp.lt.s32.totalorder %v978_v17, 0  ;;  %v2346_v19 = vceil.f32 %v978_v17  ;;  %v2347_v20 = vfloor.f32 %v978_v17 }
 0x296   :  { %2433 = vset.pattern.permute.xlu0 %v2532_v22 }
 0x297   :  { %v2348_v33 = vsel %vm2345_vm5, %v2346_v19, %v2347_v20  ;;  %1231 = vperm.xlu0 %2433, %v3120_v25  }
 0x298   :  { %v2349_v38 = vcvt.f32.s32 %v2348_v33  ;;  %2427 = vset.pattern.permute.xlu1 %v2532_v22 }
 0x299   :  { %1222 = vperm.xlu1 %2427, %v1165_v35  }
 0x29a   :  { %v3125_v44 = vand.u32 15, %v2349_v38 }
 0x29b   :  { %2430 = vset.pattern.permute.xlu2 %v2532_v22 }
 0x29c   :  { %1219 = vperm.xlu2 %2430, %v1164_v43   ;;  %v1234_v45 = vperm.slane %v3125_v44, 0  ;;  %v1004_v47 = vpop.f32.mrf.mxu3  ;;  %v1056_v52 = vpop.f32.mrf.mxu2  ;;  %v1394_v4 = vperm.slane %v3125_v44, 2  ;;  %v1306_v39 = vperm.slane %v3125_v44, 1 }
 0x29d   :  { %v1196_v46 = vpop.permute.xlu2 %1195  ;;  %vm2360_vm8 = vcmp.lt.s32.totalorder %v1056_v52, 0  ;;  %v2361_v50 = vceil.f32 %v1056_v52  ;;  %v2362_v54 = vfloor.f32 %v1056_v52  ;;  %v2351_v0 = vceil.f32 %v1004_v47 }
 0x29e   :  { %vm3129_vm7 = vcmp.eq.s32.totalorder %v1196_v46, %v1234_v45  ;;  %v1193_v56 = vpop.permute.xlu1 %1192  ;;  %v2352_v1 = vfloor.f32 %v1004_v47  ;;  %vm2350_vm14 = vcmp.lt.s32.totalorder %v1004_v47, 0 }
 0x29f   :  { %v1265_v32 = vpop.permute.xlu0 %1264  ;;  %2458 = vset.pattern.permute.xlu0 %v2531_v21  ;;  %v2363_v34 = vsel %vm2360_vm8, %v2361_v50, %v2362_v54  ;;  %vm3180_vm6 = vcmp.eq.s32.totalorder %v1193_v56, %v1234_v45 }
 0x2a0   :  { %v2364_v59 = vcvt.f32.s32 %v2363_v34  ;;  %v2353_v6 = vsel %vm2350_vm14, %v2351_v0, %v2352_v1  ;;  %vm3184_vm8 = vcmp.eq.s32.totalorder %v1265_v32, %v1306_v39 }
 0x2a1   :  { %2431 = vset.pattern.permute.xlu1 %v2534_v24  ;;  %v2354_v11 = vcvt.f32.s32 %v2353_v6  ;;  %vm1331_vm14 = vmor %vm3180_vm6, %vm3184_vm8 }
 0x2a2   :  { %1291 = vperm.xlu1 %2431, %v1164_v43   ;;  %v3145_v55 = vand.u32 15, %v2364_v59 }
 0x2a4   :  { %2432 = vset.pattern.permute.xlu2 %v2531_v21  ;;  %v1450_v37 = vpop.f32.mrf.mxu2  ;;  %v1237_v2 = vperm.slane %v3145_v55, 0  ;;  %v1309_v3 = vperm.slane %v3145_v55, 1  ;;  %v1397_v40 = vperm.slane %v3145_v55, 2 }
 0x2a5   :  { %1379 = vperm.xlu2 %2432, %v1164_v43   ;;  %v3141_v60 = vpop.f32.mrf.mxu3  ;;  %v1617_v62 = vsel %vm1417_vm13, %v1450_v37, 0.0 }
 0x2a6   :  { %v3143_v31 = vpop.permute.xlu2 %1358  ;;  %1646 = vrot.lane.b32.xlu0 %v1617_v62, %s2527_s11  ;;  %vm3176_vm4 = vcmp.eq.s32.totalorder %v3118_v15, %v1309_v3  ;;  %v3198_v15 = vand.u32 15, %v2354_v11  ;;  %v3219_v49 = vpop.f32.mrf.mxu0 }
 0x2a8   :  { %v1371_v51 = vpop.permute.xlu1 %1370  ;;  %v1307_v47 = vperm.slane %v3198_v15, 1  ;;  %v1235_v52 = vperm.slane %v3198_v15, 0  ;;  %v1395_v50 = vperm.slane %v3198_v15, 2 }
 0x2a9   :  { %v1211_v57 = vpop.permute.xlu0 %1210  ;;  %vm1409_vm11 = vcmp.eq.s32.totalorder %v1371_v51, %v1397_v40 }
 0x2aa   :  { %1297 = vperm.xlu1 %2431, %v3148_v63   ;;  %vm3169_vm2 = vcmp.eq.s32.totalorder %v1211_v57, %v1237_v2  ;;  %vm1405_vm6 = vcmp.eq.s32.totalorder %v3143_v31, %v1395_v50 }
 0x2ab   :  { %vm1337_vm9 = vmor %vm3169_vm2, %vm3176_vm4 }
 0x2ac   :  { %v3156_v36 = vpop.f32.mrf.mxu2  ;;  %vm1425_vm2 = vmor %vm1337_vm9, %vm1409_vm11 }
 0x2ad   :  { %2434 = vset.pattern.permute.xlu2 %v2534_v24  ;;  %v1473_v5 = vpop.f32.mrf.mxu3  ;;  %v1618_v9 = vsel %vm3114_vm3, %v3156_v36, 0.0  ;;  %v1030_v24 = vpop.f32.mrf.mxu1 }
 0x2ae   :  { %1303 = vperm.xlu2 %2434, %v3120_v25   ;;  %v1356_v35 = vpop.permute.xlu2 %1355  ;;  %v2356_v13 = vceil.f32 %v1030_v24  ;;  %v2357_v16 = vfloor.f32 %v1030_v24  ;;  %vm2355_vm5 = vcmp.lt.s32.totalorder %v1030_v24, 0  ;;  %v1496_v51 = vpop.f32.mrf.mxu0 }
 0x2af   :  { %vm3159_vm15 = vcmp.eq.s32.totalorder %v1356_v35, %v1394_v4 }
 0x2b0   :  { %v2358_v33 = vsel %vm2355_vm5, %v2356_v13, %v2357_v16  ;;  %vm2365_vm5 = vcmp.lt.s32.totalorder %v3141_v60, 0 }
 0x2b1   :  { %v1199_v17 = vpop.permute.xlu1 %1198  ;;  %v2359_v48 = vcvt.f32.s32 %v2358_v33 }
 0x2b2   :  { %v1268_v18 = vpop.permute.xlu0 %1267  ;;  %2437 = vset.pattern.permute.xlu1 %v2531_v21  ;;  %vm1245_vm9 = vcmp.eq.s32.totalorder %v1199_v17, %v1235_v52 }
 0x2b3   :  { %vm1316_vm10 = vcmp.eq.s32.totalorder %v1268_v18, %v1306_v39  ;;  %1385 = vperm.xlu1 %2437, %v3148_v63   ;;  %v3231_v32 = vand.u32 15, %v2359_v48 }
 0x2b4   :  { %vm1332_vm12 = vmor %vm3129_vm7, %vm1316_vm10  ;;  %vm1403_vm7 = vcmp.eq.s32.totalorder %v3105_v7, %v1394_v4  ;;  %v2366_v7 = vceil.f32 %v3141_v60 }
 0x2b5   :  { %vm3202_vm13 = vmor %vm1332_vm12, %vm3159_vm15  ;;  %v3206_v43 = vpop.f32.mrf.mxu3  ;;  %v3234_v34 = vpop.f32.mrf.mxu1  ;;  %v1236_v58 = vperm.slane %v3231_v32, 0  ;;  %v1308_v61 = vperm.slane %v3231_v32, 1 }
 0x2b6   :  { %v1620_v44 = vsel %vm3202_vm13, %v3206_v43, 0.0  ;;  %2435 = vset.pattern.permute.xlu2 %v2531_v21  ;;  %v1542_v45 = vpop.f32.mrf.mxu2  ;;  %vm1419_vm15 = vmor %vm1331_vm14, %vm1403_vm7 }
 0x2b7   :  { %1391 = vperm.xlu2 %2435, %v3120_v25   ;;  %v1277_v46 = vpop.permute.xlu2 %1276  ;;  %v1625_v53 = vsel %vm1425_vm2, %v1542_v45, 0.0  ;;  %v2367_v25 = vfloor.f32 %v3141_v60  ;;  %v1619_v54 = vsel %vm1419_vm15, %v1473_v5, 0.0  ;;  %v1396_v60 = vperm.slane %v3231_v32, 2 }
 0x2b8   :  { %1654 = vrot.lane.b32.xlu0 %v1625_v53, %s2527_s11  ;;  %vm1319_vm12 = vcmp.eq.s32.totalorder %v1277_v46, %v1308_v61  ;;  %v2376_v45 = vceil.f32 %v3234_v34  ;;  %v2377_v46 = vfloor.f32 %v3234_v34 }
 0x2b9   :  { %v2368_v59 = vsel %vm2365_vm5, %v2366_v7, %v2367_v25 }
 0x2ba   :  { %v1271_v21 = vpop.permute.xlu1 %1270  ;;  %v2369_v62 = vcvt.f32.s32 %v2368_v59 }
 0x2bb   :  { %vm1317_vm4 = vcmp.eq.s32.totalorder %v1271_v21, %v1307_v47  ;;  %v1205_v56 = vpop.permute.xlu0 %1204  ;;  %1648 = vrot.lane.b32.xlu1 %v1619_v54, %s2527_s11  ;;  %v2372_v21 = vfloor.f32 %v3219_v49 }
 0x2bc   :  { %vm1333_vm10 = vmor %vm1245_vm9, %vm1317_vm4  ;;  %vm1247_vm11 = vcmp.eq.s32.totalorder %v1205_v56, %v1236_v58 }
 0x2bd   :  { %vm1421_vm8 = vmor %vm1333_vm10, %vm1405_vm6  ;;  %v1519_v31 = vpop.f32.mrf.mxu1  ;;  %v1565_v24 = vpop.f32.mrf.mxu3 }
 0x2be   :  { %v1621_v0 = vsel %vm1421_vm8, %v1496_v51, 0.0  ;;  %vm1335_vm14 = vmor %vm1247_vm11, %vm1319_vm12 }
 0x2bf   :  { %2436 = vset.pattern.permute.xlu2 %v2532_v22  ;;  %v3244_v22 = vand.u32 15, %v2369_v62 }
 0x2c0   :  { %1225 = vperm.xlu2 %2436, %v3148_v63   ;;  %v1377_v37 = vpop.permute.xlu2 %1376 }
 0x2c1   :  { %v1238_v63 = vperm.slane %v3244_v22, 0  ;;  %v1310_v6 = vperm.slane %v3244_v22, 1  ;;  %v1398_v35 = vperm.slane %v3244_v22, 2 }
 0x2c3   :  { %v1217_v57 = vpop.permute.xlu1 %1216  ;;  %1650 = vrot.lane.b32.xlu1 %v1621_v0, %s2527_s11  ;;  %vm1411_vm9 = vcmp.eq.s32.totalorder %v1377_v37, %v1398_v35 }
 0x2c4   :  { %v1365_v1 = vpop.permute.xlu0 %1364  ;;  %vm1251_vm4 = vcmp.eq.s32.totalorder %v1217_v57, %v1238_v63 }
 0x2c5   :  { %vm1407_vm7 = vcmp.eq.s32.totalorder %v1365_v1, %v1396_v60  ;;  %v3288_v25 = vpop.f32.mrf.mxu1 }
 0x2c6   :  { %vm1423_vm2 = vmor %vm1335_vm14, %vm1407_vm7 }
 0x2c7   :  { %v1623_v4 = vsel %vm1423_vm2, %v1519_v31, 0.0 }
 0x2c8   :  { %1652 = vrot.lane.b32.xlu2 %v1623_v4, %s2527_s11 }
 0x2c9   :  { %v1202_v5 = vpop.permute.xlu2 %1201 }
 0x2ca   :  { %vm3250_vm15 = vcmp.eq.s32.totalorder %v1202_v5, %v1235_v52 }
 0x2cc   :  { %v1289_v8 = vpop.permute.xlu1 %1288 }
 0x2cd   :  { %vm1323_vm5 = vcmp.eq.s32.totalorder %v1289_v8, %v1310_v6  ;;  %v1611_v62 = vpop.f32.mrf.mxu1 }
 0x2ce   :  { %vm1339_vm10 = vmor %vm1251_vm4, %vm1323_vm5 }
 0x2cf   :  { %vm1427_vm6 = vmor %vm1339_vm10, %vm1411_vm9  ;;  %vm2375_vm9 = vcmp.lt.s32.totalorder %v3234_v34, 0 }
 0x2d0   :  { %v1627_v10 = vsel %vm1427_vm6, %v1565_v24, 0.0 }
 0x2d1   :  { %1656 = vrot.lane.b32.xlu1 %v1627_v10, %s2527_s11  ;;  %v1633_v10 = vlaneseq }
 0x2d2   :  { %v1274_v42 = vpop.permute.xlu2 %1273 }
 0x2d3   :  { %vm1318_vm8 = vcmp.eq.s32.totalorder %v1274_v42, %v1307_v47 }
 0x2d4   :  { %vm1334_vm11 = vmor %vm3250_vm15, %vm1318_vm8 }
 0x2db   :  { %v1362_v11 = vpop.permute.xlu2 %1361 }
 0x2dc   :  { %vm1406_vm12 = vcmp.eq.s32.totalorder %v1362_v11, %v1395_v50  ;;  %v2371_v50 = vceil.f32 %v3219_v49 }
 0x2dd   :  { %vm3261_vm14 = vmor %vm1334_vm11, %vm1406_vm12 }
 0x2de   :  { %v1286_v16 = vpop.permute.xlu0 %1285  ;;  %v1214_v17 = vpop.permute.xlu1 %1213 }
 0x2df   :  { %vm1322_vm7 = vcmp.eq.s32.totalorder %v1286_v16, %v1309_v3  ;;  %vm1250_vm2 = vcmp.eq.s32.totalorder %v1214_v17, %v1237_v2  ;;  %v2378_v2 = vsel %vm2375_vm9, %v2376_v45, %v2377_v46  ;;  %v1634_v16 = vshrl.u32 %v1633_v10, 7 }
 0x2e0   :  { %vm1338_vm4 = vmor %vm1250_vm2, %vm1322_vm7  ;;  %v2379_v55 = vcvt.f32.s32 %v2378_v2  ;;  %vm2370_vm2 = vcmp.lt.s32.totalorder %v3219_v49, 0  ;;  %v1636_v17 = vand.u32 127, %v1633_v10  ;;  %v1614_v10 = vpop.f32.mrf.mxu1 }
 0x2e1   :  { %v2373_v56 = vsel %vm2370_vm2, %v2371_v50, %v2372_v21  ;;  %v1545_v21 = vpop.f32.mrf.mxu2 }
 0x2e2   :  { %v1184_v7 = vand.u32 15, %v2379_v55 }
 0x2e4   :  { %v1229_v18 = vpop.permute.xlu2 %1228  ;;  %v1312_v54 = vperm.slane %v1184_v7, 1  ;;  %v1240_v32 = vperm.slane %v1184_v7, 0 }
 0x2e7   :  { %v1374_v19 = vpop.permute.xlu1 %1373 }
 0x2e8   :  { %vm1410_vm15 = vcmp.eq.s32.totalorder %v1374_v19, %v1397_v40 }
 0x2e9   :  { %vm3271_vm5 = vmor %vm1338_vm4, %vm1410_vm15  ;;  %vm1255_vm15 = vcmp.eq.s32.totalorder %v1229_v18, %v1240_v32 }
 0x2ed   :  { %v1383_v15 = vpop.permute.xlu2 %1382 }
 0x2ee   :  { %v1280_v33 = vpop.permute.xlu0 %1279 }
 0x2ef   :  { %vm1320_vm10 = vcmp.eq.s32.totalorder %v1280_v33, %v1308_v61  ;;  %v2374_v61 = vcvt.f32.s32 %v2373_v56 }
 0x2f0   :  { %v1208_v3 = vpop.permute.xlu1 %1207 }
 0x2f1   :  { %vm1248_vm6 = vcmp.eq.s32.totalorder %v1208_v3, %v1236_v58  ;;  %v1400_v58 = vperm.slane %v1184_v7, 2  ;;  %v1183_v51 = vand.u32 15, %v2374_v61  ;;  %v1626_v7 = vsel %vm3271_vm5, %v1545_v21, 0.0 }
 0x2f2   :  { %vm1336_vm8 = vmor %vm1248_vm6, %vm1320_vm10 }
 0x2f3   :  { %v1399_v1 = vperm.slane %v1183_v51, 2  ;;  %v1311_v4 = vperm.slane %v1183_v51, 1  ;;  %v1239_v5 = vperm.slane %v1183_v51, 0 }
 0x2f6   :  { %v1220_v47 = vpop.permute.xlu2 %1219 }
 0x2f7   :  { %vm3278_vm11 = vcmp.eq.s32.totalorder %v1220_v47, %v1238_v63  ;;  %v1368_v48 = vpop.permute.xlu0 %1367 }
 0x2f8   :  { %vm1408_vm12 = vcmp.eq.s32.totalorder %v1368_v48, %v1396_v60  ;;  %v3291_v60 = vpop.f32.mrf.mxu0 }
 0x2f9   :  { %vm3282_vm7 = vmor %vm1336_vm8, %vm1408_vm12  ;;  %v1301_v53 = vpop.permute.xlu1 %1300  ;;  %v1622_v38 = vsel %vm3261_vm14, %v3291_v60, 0.0 }
 0x2fa   :  { %vm1327_vm4 = vcmp.eq.s32.totalorder %v1301_v53, %v1312_v54  ;;  %v1624_v41 = vsel %vm3282_vm7, %v3288_v25, 0.0 }
 0x2fb   :  { %vm1343_vm9 = vmor %vm1255_vm15, %vm1327_vm4 }
 0x2ff   :  { %v1380_v34 = vpop.permute.xlu2 %1379 }
 0x300   :  { %v1295_v59 = vpop.permute.xlu0 %1294  ;;  %v1588_v8 = vpop.f32.mrf.mxu0 }
 0x301   :  { %vm1325_vm4 = vcmp.eq.s32.totalorder %v1295_v59, %v1311_v4 }
 0x302   :  { %v1389_v37 = vpop.permute.xlu1 %1388 }
 0x303   :  { %vm1415_vm10 = vcmp.eq.s32.totalorder %v1389_v37, %v1400_v58  ;;  %v2463_v37 = vld [vmem:[%s3476_s3 + $0x1] ss:$0 sm:$0xff] }
 0x304   :  { %vm1431_vm6 = vmor %vm1343_vm9, %vm1415_vm10  ;;  %vm1413_vm9 = vcmp.eq.s32.totalorder %v1383_v15, %v1399_v1 }
 0x305   :  { %v1631_v57 = vsel %vm1431_vm6, %v1611_v62, 0.0 }
 0x306   :  { %1660 = vrot.lane.b32.xlu1 %v1631_v57, %s2527_s11 }
 0x308   :  { %v1304_v49 = vpop.permute.xlu2 %1303 }
 0x309   :  { %vm3294_vm8 = vcmp.eq.s32.totalorder %v1304_v49, %v1312_v54  ;;  %v1232_v31 = vpop.permute.xlu0 %1231  ;;  %v2462_v54 = vld [vmem:[%s3476_s3 + $0x4] ss:$0 sm:$0xff] }
 0x30a   :  { %vm3298_vm12 = vcmp.eq.s32.totalorder %v1232_v31, %v1240_v32  ;;  %v1568_v31 = vpop.f32.mrf.mxu3 }
 0x30b   :  { %vm1344_vm2 = vmor %vm3298_vm12, %vm3294_vm8  ;;  %v1223_v39 = vpop.permute.xlu1 %1222  ;;  %vm1412_vm12 = vcmp.eq.s32.totalorder %v1380_v34, %v1398_v35 }
 0x30c   :  { %vm1253_vm15 = vcmp.eq.s32.totalorder %v1223_v39, %v1239_v5 }
 0x30d   :  { %vm1341_vm10 = vmor %vm1253_vm15, %vm1325_vm4 }
 0x30e   :  { %vm1429_vm6 = vmor %vm1341_vm10, %vm1413_vm9  ;;  %vm3520_vm10 = vcmask 64512  }
 0x30f   :  { %v1629_v24 = vsel %vm1429_vm6, %v1588_v8, 0.0 }
 0x310   :  { %1658 = vrot.lane.b32.xlu0 %v1629_v24, %s2527_s11  ;;  %v2438_v24 = vpack.i.bf16 %v2624_v14, %v2617_v12  ;;  %v1591_v14 = vpop.f32.mrf.mxu0 }
 0x311   :  { %v1392_v42 = vpop.permute.xlu2 %1391 }
 0x312   :  { %vm1416_vm1 = vcmp.eq.s32.totalorder %v1392_v42, %v1400_v58 }
 0x313   :  { %vm3307_vm0 = vmor %vm1344_vm2, %vm1416_vm1  ;;  %vm3321_vm1 = vcmp.le.s32.totalorder %v1634_v16, %v1636_v17  ;;  %v2466_v17 = vld [vmem:[%s3476_s3 + $0x7] ss:$0 sm:$0xff] }
 0x314   :  { %v1292_v18 = vpop.permute.xlu1 %1291  ;;  %v1632_v42 = vsel %vm3307_vm0, %v1614_v10, 0.0 }
 0x315   :  { %vm1324_vm8 = vcmp.eq.s32.totalorder %v1292_v18, %v1310_v6  ;;  %v2460_v6 = vld [vmem:[%s3476_s3] ss:$0 sm:$0xff] }
 0x316   :  { %vm1340_vm4 = vmor %vm3278_vm11, %vm1324_vm8 }
 0x317   :  { %vm3317_vm15 = vmor %vm1340_vm4, %vm1412_vm12 }
 0x318   :  { %v1647_v45 = vpop.permute.xlu0 %1646  ;;  %vm3523_vm8 = vmmov %vm3520_vm10  ;;  %v1628_v13 = vsel %vm3317_vm15, %v1568_v31, 0.0 }
 0x319   :  { %v1670_v35 = vsel %vm3321_vm1, %v1647_v45, %v1618_v9  ;;  %v2461_v9 = vld [vmem:[%s3476_s3 + $0x3] ss:$0 sm:$0xff]  ;;  %vm3524_vm5 = vmmov %vm3523_vm8 }
 0x31a   :  { %v1226_v33 = vpop.permute.xlu2 %1225  ;;  %v1678_v46 = vmul.f32 0.35355338, %v1670_v35  ;;  %vm3525_vm13 = vmmov %vm3524_vm5 }
 0x31b   :  { %vm3328_vm2 = vcmp.eq.s32.totalorder %v1226_v33, %v1239_v5  ;;  %vm3526_vm7 = vmmov %vm3524_vm5 }
 0x31c   :  { %v1298_v3 = vpop.permute.xlu1 %1297  ;;  %v3338_v2 = vadd.f32 %v2460_v6, %v1678_v46  ;;  %vm3527_vm14 = vmmov %vm3524_vm5  ;;  %v2467_v6 = vld [vmem:[%s3476_s3 + $0x6] ss:$0 sm:$0xff] }
 0x31d   :  { %vm1326_vm11 = vcmp.eq.s32.totalorder %v1298_v3, %v1311_v4  ;;  %v2465_v4 = vld [vmem:[%s3476_s3 + $0x5] ss:$0 sm:$0xff]  ;;  %vm3528_vm12 = vmmov %vm3524_vm5 }
 0x31e   :  { %vm1342_vm9 = vmor %vm3328_vm2, %vm1326_vm11  ;;  %v1726_v47 = vsel %vm3520_vm10, %v3338_v2, -inf }
 0x31f   :  { %1727 = vmax.xlane.f32.xlu2 %v1726_v47  ;;  %vm3529_vm0 = vmmov %vm3524_vm5 }
 0x320   :  { %vm3530_vm4 = vmmov %vm3529_vm0 }
 0x321   :  { %vm3531_vm15 = vmmov %vm3529_vm0 }
 0x322   :  { %v1653_v36 = vpop.permute.xlu2 %1652  ;;  %vm3533_vm2 = vmmov %vm3529_vm0 }
 0x323   :  { %v1673_v55 = vsel %vm3321_vm1, %v1653_v36, %v1624_v41  ;;  %vm3534_vm11 = vmmov %vm3529_vm0 }
 0x324   :  { %v1681_v40 = vmul.f32 0.35355338, %v1673_v55  ;;  %vm3536_vm10 = vmmov %vm3529_vm0 }
 0x325   :  { %v1386_v48 = vpop.permute.xlu1 %1385 }
 0x326   :  { %v3352_v53 = vadd.f32 %v2461_v9, %v1681_v40  ;;  %vm1414_vm3 = vcmp.eq.s32.totalorder %v1386_v48, %v1399_v1 }
 0x327   :  { %vm3354_vm6 = vmor %vm1342_vm9, %vm1414_vm3 }
 0x328   :  { %v1735_v52 = vsel %vm3523_vm8, %v3352_v53, -inf  ;;  %v1630_v11 = vsel %vm3354_vm6, %v1591_v14, 0.0  ;;  %vm3535_vm9 = vmmov %vm3529_vm0 }
 0x329   :  { %1736 = vmax.xlane.f32.xlu2 %v1735_v52  ;;  %vm3537_vm3 = vmmov %vm3529_vm0 }
 0x32a   :  { %v1655_v25 = vpop.permute.xlu0 %1654  ;;  %vm3538_vm6 = vmmov %vm3529_vm0 }
 0x32b   :  { %v1674_v56 = vsel %vm3321_vm1, %v1655_v25, %v1626_v7  ;;  %vm3539_vm8 = vmmov %vm3529_vm0 }
 0x32c   :  { %v1682_v32 = vmul.f32 0.35355338, %v1674_v56 }
 0x32d   :  { %v1649_v34 = vpop.permute.xlu1 %1648 }
 0x32e   :  { %v1671_v58 = vsel %vm3321_vm1, %v1649_v34, %v1620_v44  ;;  %v3373_v59 = vadd.f32 %v2462_v54, %v1682_v32  ;;  %v2464_v44 = vld [vmem:[%s3476_s3 + $0x2] ss:$0 sm:$0xff]  ;;  %s2536_s3 = smov 16  }
 0x32f   :  { %v1679_v61 = vmul.f32 0.35355338, %v1671_v58 }
 0x330   :  { %v1738_v20 = vsel %vm3524_vm5, %v3373_v59, -inf  ;;  %vm3540_vm5 = vmmov %vm3529_vm0 }
 0x331   :  { %1739 = vmax.xlane.f32.xlu2 %v1738_v20  ;;  %v1719_v43 = vadd.f32 %v2463_v37, %v1679_v61  ;;  %v2453_v37 = vpack.i.bf16 %v2722_v29, %v2708_v26 }
 0x333   :  { %v1729_v49 = vsel %vm3525_vm13, %v1719_v43, -inf  ;;  %vm3541_vm13 = vmmov %vm3529_vm0 }
 0x335   :  { %v1651_v62 = vpop.permute.xlu1 %1650 }
 0x336   :  { %v1672_v51 = vsel %vm3321_vm1, %v1651_v62, %v1622_v38 }
 0x337   :  { %v1680_v57 = vmul.f32 0.35355338, %v1672_v51 }
 0x339   :  { %v1720_v0 = vadd.f32 %v2464_v44, %v1680_v57 }
 0x33a   :  { %1730 = vmax.xlane.f32.xlu0 %v1729_v49 }
 0x33b   :  { %v1732_v1 = vsel %vm3526_vm7, %v1720_v0, -inf  ;;  %vm3542_vm7 = vmmov %vm3529_vm0 }
 0x33c   :  { %1733 = vmax.xlane.f32.xlu1 %v1732_v1 }
 0x343   :  { %v1657_v60 = vpop.permute.xlu1 %1656 }
 0x344   :  { %v1675_v63 = vsel %vm3321_vm1, %v1657_v60, %v1628_v13 }
 0x345   :  { %v1683_v5 = vmul.f32 0.35355338, %v1675_v63 }
 0x347   :  { %v1723_v39 = vadd.f32 %v2465_v4, %v1683_v5 }
 0x349   :  { %v1741_v8 = vsel %vm3527_vm14, %v1723_v39, -inf  ;;  %vm3543_vm14 = vmmov %vm3529_vm0 }
 0x34a   :  { %1742 = vmax.xlane.f32.xlu0 %v1741_v8 }
 0x35e   :  { %2439 = vrot.lane.b32.xlu0 %v2438_v24, %s2535_s14 }
 0x378   :  { %v1661_v16 = vpop.permute.xlu1 %1660 }
 0x379   :  { %v1677_v18 = vsel %vm3321_vm1, %v1661_v16, %v1632_v42  ;;  %v2448_v42 = vpack.i.bf16 %v2714_v28, %v2724_v30 }
 0x37a   :  { %v1685_v19 = vmul.f32 0.35355338, %v1677_v18  ;;  %v2443_v18 = vpack.i.bf16 %v2712_v27, %v2690_v23 }
 0x37c   :  { %v3408_v33 = vadd.f32 %v2466_v17, %v1685_v19 }
 0x37e   :  { %v1747_v12 = vsel %vm3528_vm12, %v3408_v33, -inf  ;;  %vm3544_vm12 = vmmov %vm3529_vm0 }
 0x37f   :  { %1748 = vmax.xlane.f32.xlu2 %v1747_v12 }
 0x382   :  { %v1659_v45 = vpop.permute.xlu0 %1658 }
 0x383   :  { %v1676_v22 = vsel %vm3321_vm1, %v1659_v45, %v1630_v11  ;;  %vm3532_vm1 = vmmov %vm3529_vm0 }
 0x384   :  { %v1684_v35 = vmul.f32 0.35355338, %v1676_v22 }
 0x386   :  { %v1724_v46 = vadd.f32 %v2467_v6, %v1684_v35 }
 0x388   :  { %v1744_v3 = vsel %vm3529_vm0, %v1724_v46, -inf }
 0x389   :  { %1745 = vmax.xlane.f32.xlu1 %v1744_v3 }
 0x392   :  { %v1728_v47 = vpop.xlane.xlu2 %1727 }
 0x393   :  { %v1750_v41 = vsub.f32 %v3338_v2, %v1728_v47 }
 0x395   :  { %v1758_v36 = vmul.f32 1.442695, %v1750_v41 }
 0x397   :  { %2468 = vpow2.f32 %v1758_v36 }
 0x39c   :  { %v1737_v9 = vpop.xlane.xlu2 %1736 }
 0x39d   :  { %v1753_v55 = vsub.f32 %v3352_v53, %v1737_v9  ;;  %v2469_v40 = vpop.eup %2468 }
 0x39e   :  { %v1774_v50 = vsel %vm3530_vm4, %v2469_v40, 0.0  ;;  %vm2051_vm4 = vcmask 195584  }
 0x39f   :  { %v1764_v48 = vmul.f32 1.442695, %v1753_v55  ;;  %1775 = vadd.xlane.f32.xlu0 %v1774_v50 }
 0x3a1   :  { %2470 = vpow2.f32 %v1764_v48 }
 0x3a4   :  { %v1740_v21 = vpop.xlane.xlu2 %1739 }
 0x3a5   :  { %v1754_v54 = vsub.f32 %v3373_v59, %v1740_v21 }
 0x3a7   :  { %v3423_v15 = vpop.eup %2470  ;;  %v1766_v34 = vmul.f32 1.442695, %v1754_v54 }
 0x3a8   :  { %v1783_v52 = vsel %vm3531_vm15, %v3423_v15, 0.0  ;;  %vm3545_vm15 = vmmov %vm3529_vm0 }
 0x3a9   :  { %1784 = vadd.xlane.f32.xlu0 %v1783_v52 }
 0x3ad   :  { %v1731_v7 = vpop.xlane.xlu0 %1730 }
 0x3ae   :  { %v1751_v2 = vsub.f32 %v1719_v43, %v1731_v7 }
 0x3af   :  { %v1734_v25 = vpop.xlane.xlu1 %1733 }
 0x3b0   :  { %v1760_v56 = vmul.f32 1.442695, %v1751_v2  ;;  %v1752_v53 = vsub.f32 %v1720_v0, %v1734_v25 }
 0x3b2   :  { %2472 = vpow2.f32 %v1760_v56  ;;  %v1762_v32 = vmul.f32 1.442695, %v1752_v53 }
 0x3b4   :  { %2474 = vpow2.f32 %v1762_v32 }
 0x3b5   :  { %2476 = vpow2.f32 %v1766_v34 }
 0x3b8   :  { %v2473_v58 = vpop.eup %2472 }
 0x3b9   :  { %v1777_v20 = vsel %vm3532_vm1, %v2473_v58, 0.0  ;;  %vm2048_vm1 = vcmask 130048  }
 0x3ba   :  { %v3429_v61 = vpop.eup %2474  ;;  %1778 = vadd.xlane.f32.xlu1 %v1777_v20 }
 0x3bb   :  { %v1780_v38 = vsel %vm3533_vm2, %v3429_v61, 0.0  ;;  %v2477_v43 = vpop.eup %2476  ;;  %vm3546_vm2 = vcmask 261120  }
 0x3bc   :  { %1781 = vadd.xlane.f32.xlu2 %v1780_v38  ;;  %v1786_v51 = vsel %vm3534_vm11, %v2477_v43, 0.0  ;;  %vm3547_vm11 = vmmov %vm3529_vm0 }
 0x3bd   :  { %2454 = vrot.lane.b32.xlu0 %v2453_v37, %s2535_s14  ;;  %v1743_v59 = vpop.xlane.xlu0 %1742 }
 0x3be   :  { %v1755_v62 = vsub.f32 %v1723_v39, %v1743_v59 }
 0x3c0   :  { %v1768_v44 = vmul.f32 1.442695, %v1755_v62 }
 0x3c2   :  { %2478 = vpow2.f32 %v1768_v44  ;;  %1787 = vadd.xlane.f32.xlu1 %v1786_v51 }
 0x3c8   :  { %v2479_v57 = vpop.eup %2478 }
 0x3c9   :  { %v1789_v49 = vsel %vm3535_vm9, %v2479_v57, 0.0  ;;  %vm3548_vm9 = vmmov %vm3546_vm2 }
 0x3ca   :  { %1790 = vadd.xlane.f32.xlu2 %v1789_v49 }
 0x3d0   :  { %v2440_v26 = vpop.permute.xlu0 %2439 }
 0x3d1   :  { %v2442_v29 = vunpack.i.h.bf16 %v2440_v26  ;;  %v2441_v0 = vunpack.i.l.bf16 %v2440_v26 }
 0x3d3   :  { %1835 = vmatpush.msra.mxu2 %v2441_v0  ;;  %1861 = vmatpush.msra.mxu3 %v2442_v29 }
 0x3f2   :  { %v1749_v1 = vpop.xlane.xlu2 %1748 }
 0x3f3   :  { %v1757_v31 = vsub.f32 %v3408_v33, %v1749_v1 }
 0x3f5   :  { %v1772_v13 = vmul.f32 1.442695, %v1757_v31 }
 0x3f7   :  { %2480 = vpow2.f32 %v1772_v13 }
 0x3fc   :  { %v1746_v60 = vpop.xlane.xlu1 %1745 }
 0x3fd   :  { %v3439_v4 = vpop.eup %2480  ;;  %v1756_v63 = vsub.f32 %v1724_v46, %v1746_v60 }
 0x3fe   :  { %v1795_v5 = vsel %vm3536_vm10, %v3439_v4, 0.0 }
 0x3ff   :  { %v1770_v39 = vmul.f32 1.442695, %v1756_v63  ;;  %1796 = vadd.xlane.f32.xlu2 %v1795_v5 }
 0x401   :  { %2482 = vpow2.f32 %v1770_v39 }
 0x407   :  { %v2483_v8 = vpop.eup %2482 }
 0x408   :  { %v1792_v24 = vsel %vm3537_vm3, %v2483_v8, 0.0 }
 0x409   :  { %1793 = vadd.xlane.f32.xlu1 %v1792_v24 }
 0x412   :  { %v1776_v10 = vpop.xlane.xlu0 %1775 }
 0x413   :  { %2484 = vrcp.f32 %v1776_v10 }
 0x417   :  { %2449 = vrot.lane.b32.xlu2 %v2448_v42, %s2535_s14 }
 0x419   :  { %v2485_v16 = vpop.eup %2484 }
 0x41a   :  { %v1806_v17 = vmul.f32 %v2485_v16, %v2469_v40 }
 0x41c   :  { %2252 = vmatmul.msk.f32.vlgmr.msra.gmra.mxu2 %vm3538_vm6, %v1806_v17  ;;  %v1785_v3 = vpop.xlane.xlu0 %1784 }
 0x422   :  { %2444 = vrot.lane.b32.xlu1 %v2443_v18, %s2535_s14 }
 0x42d   :  { %v1779_v19 = vpop.xlane.xlu1 %1778 }
 0x42e   :  { %2486 = vrcp.f32 %v1779_v19 }
 0x42f   :  { %v1782_v14 = vpop.xlane.xlu2 %1781  ;;  %v2455_v9 = vpop.permute.xlu0 %2454 }
 0x430   :  { %v2457_v21 = vunpack.i.h.bf16 %v2455_v9  ;;  %v2456_v7 = vunpack.i.l.bf16 %v2455_v9 }
 0x434   :  { %v2487_v33 = vpop.eup %2486 }
 0x435   :  { %v1807_v12 = vmul.f32 %v2487_v33, %v2473_v58  ;;  %v1788_v28 = vpop.xlane.xlu1 %1787 }
 0x436   :  { %2488 = vrcp.f32 %v1788_v28 }
 0x437   :  { %2253 = vmatmul.msk.f32.vlgmr.msra.gmra.mxu3 %vm3539_vm8, %v1807_v12 }
 0x43c   :  { %v2489_v45 = vpop.eup %2488 }
 0x43d   :  { %v1791_v11 = vpop.xlane.xlu2 %1790  ;;  %v1810_v23 = vmul.f32 %v2489_v45, %v2477_v43 }
 0x43e   :  { %2490 = vrcp.f32 %v1791_v11 }
 0x43f   :  { %2492 = vrcp.f32 %v1785_v3 }
 0x440   :  { %2494 = vrcp.f32 %v1782_v14 }
 0x444   :  { %v2491_v6 = vpop.eup %2490 }
 0x445   :  { %v1811_v27 = vmul.f32 %v2491_v6, %v2479_v57  ;;  %v2493_v41 = vpop.eup %2492 }
 0x446   :  { %v2495_v36 = vpop.eup %2494  ;;  %v1809_v50 = vmul.f32 %v2493_v41, %v3423_v15 }
 0x447   :  { %v1808_v52 = vmul.f32 %v2495_v36, %v3429_v61 }
 0x472   :  { %v1797_v30 = vpop.xlane.xlu2 %1796 }
 0x473   :  { %2496 = vrcp.f32 %v1797_v30 }
 0x479   :  { %v2497_v2 = vpop.eup %2496 }
 0x47a   :  { %v2450_v22 = vpop.permute.xlu2 %2449  ;;  %v1813_v54 = vmul.f32 %v2497_v2, %v3439_v4 }
 0x47b   :  { %v2452_v35 = vunpack.i.h.bf16 %v2450_v22  ;;  %v2451_v46 = vunpack.i.l.bf16 %v2450_v22 }
 0x47c   :  { %v1794_v47 = vpop.xlane.xlu1 %1793 }
 0x47d   :  { %1939 = vmatpush.msrb.mxu2 %v2451_v46  ;;  %1965 = vmatpush.msrb.mxu3 %v2452_v35  ;;  %2498 = vrcp.f32 %v1794_v47 }
 0x47e   :  { %2256 = vmatmul.msk.f32.vlgmr.msrb.gmra.mxu2 %vm3540_vm5, %v1810_v23  ;;  %2257 = vmatmul.msk.f32.vlgmr.msrb.gmra.mxu3 %vm3541_vm13, %v1811_v27 }
 0x483   :  { %v2499_v25 = vpop.eup %2498 }
 0x484   :  { %v1812_v56 = vmul.f32 %v2499_v25, %v2483_v8 }
 0x494   :  { %v2445_v55 = vpop.permute.xlu1 %2444 }
 0x495   :  { %v2447_v40 = vunpack.i.h.bf16 %v2445_v55  ;;  %v2446_v48 = vunpack.i.l.bf16 %v2445_v55 }
 0x497   :  { %1887 = vmatpush.msra.mxu0 %v2446_v48  ;;  %1913 = vmatpush.msrb.mxu1 %v2447_v40 }
 0x498   :  { %2254 = vmatmul.msk.f32.vlgmr.msra.gmra.mxu0 %vm3542_vm7, %v1808_v52  ;;  %2255 = vmatmul.msk.f32.vlgmr.msrb.gmra.mxu1 %vm3543_vm14, %v1809_v50 }
 0x499   :  { %1991 = vmatpush.msrb.mxu0 %v2456_v7  ;;  %2017 = vmatpush.msra.mxu1 %v2457_v21 }
 0x49f   :  { %v1837_v32 = vpop.f32.mrf.mxu2 }
 0x4a0   :  { %2258 = vmatmul.msk.f32.vlgmr.msrb.gmra.mxu0 %vm3544_vm12, %v1812_v56  ;;  %2259 = vmatmul.msk.f32.vlgmr.msra.gmra.mxu1 %vm3529_vm0, %v1813_v54 }
 0x4ba   :  { %v1863_v15 = vpop.f32.mrf.mxu3 }
 0x501   :  { %v1967_v53 = vpop.f32.mrf.mxu3  ;;  %v1941_v20 = vpop.f32.mrf.mxu2 }
 0x502   :  { %2034 = vrot.lane.b32.xlu2 %v1967_v53, %s2536_s3 }
 0x515   :  { %v1889_v34 = vpop.f32.mrf.mxu0  ;;  %v1915_v58 = vpop.f32.mrf.mxu1 }
 0x516   :  { %2024 = vrot.lane.b32.xlu0 %v1889_v34, %s2537_s19  ;;  %2026 = vrot.lane.b32.xlu1 %v1915_v58, %s2537_s19 }
 0x51d   :  { %v1993_v61 = vpop.f32.mrf.mxu0  ;;  %v2019_v37 = vpop.f32.mrf.mxu1 }
 0x51e   :  { %2040 = vrot.lane.b32.xlu1 %v1993_v61, %s2538_s20  ;;  %2032 = vrot.lane.b32.xlu0 %v1941_v20, %s2536_s3 }
 0x526   :  { %2042 = vrot.lane.b32.xlu0 %v2019_v37, %s2538_s20 }
 0x55c   :  { %v2035_v26 = vpop.permute.xlu2 %2034 }
 0x588   :  { %v2027_v38 = vpop.permute.xlu1 %2026  ;;  %v2025_v59 = vpop.permute.xlu0 %2024 }
 0x589   :  { %v2046_v62 = vsel %vm3545_vm15, %v1837_v32, %v2025_v59  ;;  %v2047_v49 = vsel %vm3547_vm11, %v1863_v15, %v2027_v38 }
 0x58a   :  { %v2050_v29 = vsel %vm2048_vm1, %v2047_v49, %v2035_v26 }
 0x590   :  { %v2041_v43 = vpop.permute.xlu1 %2040  ;;  %v2033_v44 = vpop.permute.xlu0 %2032 }
 0x591   :  { %v2049_v51 = vsel %vm2048_vm1, %v2046_v62, %v2033_v44 }
 0x592   :  { %v2052_v57 = vsel %vm2051_vm4, %v2049_v51, %v2041_v43 }
 0x593   :  { %2054 = vst.msk [vmem:[#allocation2] sm:$0xff] %vm3546_vm2, %v2052_v57 }
 0x598   :  { %v2043_v0 = vpop.permute.xlu0 %2042 }
 0x599   :  { %v2053_v1 = vsel %vm2051_vm4, %v2050_v29, %v2043_v0 }
 0x59a   :  { %2055 = vst.msk [vmem:[#allocation2 + $0x8] sm:$0xff] %vm3548_vm9, %v2053_v1 }
 0x59b   :  { %2068 = dma.vmem_to_hbm [thread:$0]  %s2061_s25, 256, %s2063_s23, [#allocation3], %s2540_s26, %s2540_s26, %s2537_s19  }
 0x59c   :  { %2524 = dma.done.wait [#allocation3], 256  }
 0x59d   :  { %2525 = vsyncadd [#allocation3], 4294967040 }
 0x59e   :  { %2073 = vsyncpa [#allocation3], 1 }

</bundles_post_ra>
